<compile_context>
chip_gen: v7x
topology: tpu7x:2x2x1
jax: 0.10.0
libtpu: 0.0.40
codegen_flags: <defaults>
</compile_context>

<pallas_src>
import functools

import numpy as np
import jax
import jax.numpy as jnp
from jax.experimental import pallas as pl
from jax.experimental.pallas import tpu as pltpu


HP = 128   # hidden size padded to one full vreg lane width
OP = 128   # FC output padded to one full lane width (lane-dense store)


def lstm_fc_kernel(x_ref, wih_ref, whh_ref, b_ref, fcw_ref, fcb_ref, out_ref):
    """Single-layer LSTM over time + final Linear, all in one kernel.

    x_ref   : (T*BP, I)    time-major input, batch padded to BP (mult of 8) rows
    wih_ref : (I, 4*HP)    weight_ih_l0^T, each gate block zero-padded to HP lanes
    whh_ref : (HP, 4*HP)   weight_hh_l0^T, padded rows + per-gate padded cols
    b_ref   : (1, 4*HP)    bias_ih_l0 + bias_hh_l0, per-gate zero-padded
    fcw_ref : (HP, OP)     fc.weight^T, zero-padded
    fcb_ref : (1, OP)      fc.bias, zero-padded
    out_ref : (BP, OP)     padded logits; wrapper slices [:B, :output_size]
    """
    BP, _ = out_ref.shape
    TB, _ = x_ref.shape
    T = TB // BP

    wih = wih_ref[...]
    whh = whh_ref[...]
    bias = b_ref[...]

    # ---- Hoisted input projection: one MXU call for all timesteps ----------
    # Result is time-major: rows [t*BP, (t+1)*BP) belong to timestep t.
    gx = jnp.dot(x_ref[...], wih, preferred_element_type=jnp.float32) + bias

    h = jnp.zeros((BP, HP), jnp.float32)
    c = jnp.zeros((BP, HP), jnp.float32)

    # ---- Fully unrolled recurrence: only h @ W_hh on the critical path. ----
    # gx[t*BP:(t+1)*BP, :] is a sublane-aligned (BP, 4*HP) slab (static slice),
    # and every gate slice is a 128-lane-aligned block (HP = 128).
    for t in range(T):
        gates = gx[t * BP:(t + 1) * BP, :] + jnp.dot(
            h, whh, preferred_element_type=jnp.float32)
        i = jax.nn.sigmoid(gates[:, 0 * HP:1 * HP])
        f = jax.nn.sigmoid(gates[:, 1 * HP:2 * HP])
        g = jnp.tanh(gates[:, 2 * HP:3 * HP])
        o = jax.nn.sigmoid(gates[:, 3 * HP:4 * HP])
        c = f * c + i * g
        h = o * jnp.tanh(c)

    # Dropout(out[:, -1, :]) is identity at inference time.
    # TODO(synk): training-mode dropout (p=0.3) is intentionally not implemented.
    out_ref[...] = (
        jnp.dot(h, fcw_ref[...], preferred_element_type=jnp.float32) + fcb_ref[...]
    )


def prepare_params(params, hidden_size, output_size):
    """Zero-pad PyTorch-shaped params to the lane-aligned kernel layout.

    Called ONCE at init (hoisted out of the per-call forward path).
    """
    H, O = hidden_size, output_size

    def pad_gate_cols(w):
        # (..., 4H) -> (..., 4*HP): each of the 4 gate blocks padded to HP lanes.
        pad_shape = w.shape[:-1] + (HP - H,)
        blocks = []
        for gidx in range(4):
            blocks.append(w[..., gidx * H:(gidx + 1) * H])
            blocks.append(jnp.zeros(pad_shape, w.dtype))
        return jnp.concatenate(blocks, axis=-1)

    wih_p = pad_gate_cols(params["w_ih_T"])                             # (I, 4*HP)
    whh_p = pad_gate_cols(params["w_hh_T"])                             # (H, 4*HP)
    whh_p = jnp.concatenate(
        [whh_p, jnp.zeros((HP - H, 4 * HP), jnp.float32)], axis=0)      # (HP, 4*HP)
    b_p = pad_gate_cols(params["b"])                                    # (1, 4*HP)
    fcw_p = jnp.zeros((HP, OP), jnp.float32).at[:H, :O].set(params["fc_w_T"])
    fcb_p = jnp.zeros((1, OP), jnp.float32).at[:, :O].set(params["fc_b"])
    return tuple(jax.device_put(p) for p in (wih_p, whh_p, b_p, fcw_p, fcb_p))


@functools.partial(jax.jit, static_argnames=("output_size",))
def wildfire_severity_lstm_forward(x_btI, padded_params, output_size):
    """x_btI: (B, T, I) float32, PyTorch batch_first layout."""
    B, T, I = x_btI.shape
    BP = max(8, ((B + 7) // 8) * 8)            # batch padded to sublane multiple

    # Layout plumbing done in the wrapper (free under jit, keeps the kernel's
    # serial recurrence slices tile-aligned): pad batch rows to BP, go
    # time-major, flatten to (T*BP, I).
    x_pad = jnp.zeros((BP, T, I), jnp.float32).at[:B].set(x_btI.astype(jnp.float32))
    x_tm = jnp.transpose(x_pad, (1, 0, 2)).reshape(T * BP, I)

    vmem = pl.BlockSpec(memory_space=pltpu.MemorySpace.VMEM)
    out_padded = pl.pallas_call(
        lstm_fc_kernel,
        out_shape=jax.ShapeDtypeStruct((BP, OP), jnp.float32),
        in_specs=[vmem] * 6,
        out_specs=vmem,
    )(x_tm, *padded_params)

    return out_padded[:B, :output_size]


def init_params(key, input_size, hidden_size, output_size):
    """Deterministic init mirroring PyTorch's U(-1/sqrt(H), 1/sqrt(H))."""
    k = 1.0 / np.sqrt(hidden_size)
    keys = jax.random.split(key, 6)
    w_ih = jax.random.uniform(keys[0], (4 * hidden_size, input_size), jnp.float32, -k, k)
    w_hh = jax.random.uniform(keys[1], (4 * hidden_size, hidden_size), jnp.float32, -k, k)
    b_ih = jax.random.uniform(keys[2], (4 * hidden_size,), jnp.float32, -k, k)
    b_hh = jax.random.uniform(keys[3], (4 * hidden_size,), jnp.float32, -k, k)
    fc_w = jax.random.uniform(keys[4], (output_size, hidden_size), jnp.float32, -k, k)
    fc_b = jax.random.uniform(keys[5], (output_size,), jnp.float32, -k, k)
    return {
        "w_ih_T": w_ih.T,                        # (I, 4H)
        "w_hh_T": w_hh.T,                        # (H, 4H)
        "b": (b_ih + b_hh).reshape(1, -1),       # (1, 4H)
        "fc_w_T": fc_w.T,                        # (H, O)
        "fc_b": fc_b.reshape(1, -1),             # (1, O)
    }


def reference_forward(x_btI, params):
    """Pure-JAX reference of the PyTorch forward (inference mode)."""
    B, T, I = x_btI.shape
    H = params["w_hh_T"].shape[0]
    h = jnp.zeros((B, H), jnp.float32)
    c = jnp.zeros((B, H), jnp.float32)
    for t in range(T):
        gates = x_btI[:, t, :] @ params["w_ih_T"] + h @ params["w_hh_T"] + params["b"]
        i = jax.nn.sigmoid(gates[:, 0 * H:1 * H])
        f = jax.nn.sigmoid(gates[:, 1 * H:2 * H])
        g = jnp.tanh(gates[:, 2 * H:3 * H])
        o = jax.nn.sigmoid(gates[:, 3 * H:4 * H])
        c = f * c + i * g
        h = o * jnp.tanh(c)
    return h @ params["fc_w_T"] + params["fc_b"]


if __name__ == "__main__":
    B, T, INPUT_SIZE, HIDDEN, OUTPUT = 2, 8, 4, 64, 3

    key = jax.random.PRNGKey(0)
    k_x, k_p = jax.random.split(key)
    x = jax.random.normal(k_x, (B, T, INPUT_SIZE), jnp.float32)  # (B, T, I)
    params = init_params(k_p, INPUT_SIZE, HIDDEN, OUTPUT)

    # Weight padding hoisted out of the per-call forward path.
    padded_params = prepare_params(params, HIDDEN, OUTPUT)

    out = wildfire_severity_lstm_forward(x, padded_params, OUTPUT)
    out = jax.block_until_ready(out)

    ref = reference_forward(x, params)
    np.testing.assert_allclose(np.asarray(out), np.asarray(ref), rtol=1e-3, atol=1e-4)

    assert out.shape == (B, OUTPUT)
    print("KERNEL_OK")
</pallas_src>

<mosaic_0001>
module attributes {stable_mosaic.version = 11 : i64} {
  func.func @lstm_fc_kernel(%arg0: memref<64x4xf32, #tpu.memory_space<vmem>>, %arg1: memref<4x512xf32, #tpu.memory_space<vmem>>, %arg2: memref<128x512xf32, #tpu.memory_space<vmem>>, %arg3: memref<1x512xf32, #tpu.memory_space<vmem>>, %arg4: memref<128x128xf32, #tpu.memory_space<vmem>>, %arg5: memref<1x128xf32, #tpu.memory_space<vmem>>, %arg6: memref<8x128xf32, #tpu.memory_space<vmem>>) attributes {dimension_semantics = [], scalar_prefetch = 0 : i64, scratch_operands = 0 : i64, tpu.core_type = #tpu.core_type<tc>} {
    %c0 = arith.constant 0 : index
    %c0_0 = arith.constant 0 : index
    %0 = vector.load %arg1[%c0, %c0_0] : memref<4x512xf32, #tpu.memory_space<vmem>>, vector<4x512xf32>
    %c0_1 = arith.constant 0 : index
    %c0_2 = arith.constant 0 : index
    %1 = vector.load %arg2[%c0_1, %c0_2] : memref<128x512xf32, #tpu.memory_space<vmem>>, vector<128x512xf32>
    %c0_3 = arith.constant 0 : index
    %c0_4 = arith.constant 0 : index
    %2 = vector.load %arg3[%c0_3, %c0_4] : memref<1x512xf32, #tpu.memory_space<vmem>>, vector<1x512xf32>
    %c0_5 = arith.constant 0 : index
    %c0_6 = arith.constant 0 : index
    %3 = vector.load %arg0[%c0_5, %c0_6] : memref<64x4xf32, #tpu.memory_space<vmem>>, vector<64x4xf32>
    %cst = arith.constant dense<0.000000e+00> : vector<64x512xf32>
    %4 = tpu.matmul %3, %0, %cst {dimension_numbers = #tpu.dot_dimension_numbers<[1], [0], [0], [1], [0, 0, 1, 1], [], []>} : vector<64x4xf32>, vector<4x512xf32>, vector<64x512xf32> -> vector<64x512xf32>
    %5 = vector.broadcast %2 : vector<1x512xf32> to vector<64x512xf32>
    %6 = arith.addf %4, %5 : vector<64x512xf32>
    %cst_7 = arith.constant 0.000000e+00 : f32
    %7 = vector.broadcast %cst_7 : f32 to vector<8x128xf32>
    %cst_8 = arith.constant 0.000000e+00 : f32
    %8 = vector.broadcast %cst_8 : f32 to vector<8x128xf32>
    %9 = vector.extract_strided_slice %6 {offsets = [0, 0], sizes = [8, 512], strides = [1, 1]} : vector<64x512xf32> to vector<8x512xf32>
    %cst_9 = arith.constant dense<0.000000e+00> : vector<8x512xf32>
    %10 = tpu.matmul %7, %1, %cst_9 {dimension_numbers = #tpu.dot_dimension_numbers<[1], [0], [0], [1], [0, 0, 1, 1], [], []>} : vector<8x128xf32>, vector<128x512xf32>, vector<8x512xf32> -> vector<8x512xf32>
    %11 = arith.addf %9, %10 : vector<8x512xf32>
    %12 = vector.extract_strided_slice %11 {offsets = [0, 0], sizes = [8, 128], strides = [1, 1]} : vector<8x512xf32> to vector<8x128xf32>
    %13 = arith.negf %12 : vector<8x128xf32>
    %14 = math.exp %13 : vector<8x128xf32>
    %cst_10 = arith.constant 1.000000e+00 : f32
    %15 = vector.broadcast %cst_10 : f32 to vector<8x128xf32>
    %16 = arith.addf %15, %14 : vector<8x128xf32>
    %17 = arith.divf %15, %16 : vector<8x128xf32>
    %18 = vector.extract_strided_slice %11 {offsets = [0, 128], sizes = [8, 128], strides = [1, 1]} : vector<8x512xf32> to vector<8x128xf32>
    %19 = arith.negf %18 : vector<8x128xf32>
    %20 = math.exp %19 : vector<8x128xf32>
    %cst_11 = arith.constant 1.000000e+00 : f32
    %21 = vector.broadcast %cst_11 : f32 to vector<8x128xf32>
    %22 = arith.addf %21, %20 : vector<8x128xf32>
    %23 = arith.divf %21, %22 : vector<8x128xf32>
    %24 = vector.extract_strided_slice %11 {offsets = [0, 256], sizes = [8, 128], strides = [1, 1]} : vector<8x512xf32> to vector<8x128xf32>
    %25 = math.tanh %24 : vector<8x128xf32>
    %26 = vector.extract_strided_slice %11 {offsets = [0, 384], sizes = [8, 128], strides = [1, 1]} : vector<8x512xf32> to vector<8x128xf32>
    %27 = arith.negf %26 : vector<8x128xf32>
    %28 = math.exp %27 : vector<8x128xf32>
    %cst_12 = arith.constant 1.000000e+00 : f32
    %29 = vector.broadcast %cst_12 : f32 to vector<8x128xf32>
    %30 = arith.addf %29, %28 : vector<8x128xf32>
    %31 = arith.divf %29, %30 : vector<8x128xf32>
    %32 = arith.mulf %23, %8 : vector<8x128xf32>
    %33 = arith.mulf %17, %25 : vector<8x128xf32>
    %34 = arith.addf %32, %33 : vector<8x128xf32>
    %35 = math.tanh %34 : vector<8x128xf32>
    %36 = arith.mulf %31, %35 : vector<8x128xf32>
    %37 = vector.extract_strided_slice %6 {offsets = [8, 0], sizes = [8, 512], strides = [1, 1]} : vector<64x512xf32> to vector<8x512xf32>
    %cst_13 = arith.constant dense<0.000000e+00> : vector<8x512xf32>
    %38 = tpu.matmul %36, %1, %cst_13 {dimension_numbers = #tpu.dot_dimension_numbers<[1], [0], [0], [1], [0, 0, 1, 1], [], []>} : vector<8x128xf32>, vector<128x512xf32>, vector<8x512xf32> -> vector<8x512xf32>
    %39 = arith.addf %37, %38 : vector<8x512xf32>
    %40 = vector.extract_strided_slice %39 {offsets = [0, 0], sizes = [8, 128], strides = [1, 1]} : vector<8x512xf32> to vector<8x128xf32>
    %41 = arith.negf %40 : vector<8x128xf32>
    %42 = math.exp %41 : vector<8x128xf32>
    %cst_14 = arith.constant 1.000000e+00 : f32
    %43 = vector.broadcast %cst_14 : f32 to vector<8x128xf32>
    %44 = arith.addf %43, %42 : vector<8x128xf32>
    %45 = arith.divf %43, %44 : vector<8x128xf32>
    %46 = vector.extract_strided_slice %39 {offsets = [0, 128], sizes = [8, 128], strides = [1, 1]} : vector<8x512xf32> to vector<8x128xf32>
    %47 = arith.negf %46 : vector<8x128xf32>
    %48 = math.exp %47 : vector<8x128xf32>
    %cst_15 = arith.constant 1.000000e+00 : f32
    %49 = vector.broadcast %cst_15 : f32 to vector<8x128xf32>
    %50 = arith.addf %49, %48 : vector<8x128xf32>
    %51 = arith.divf %49, %50 : vector<8x128xf32>
    %52 = vector.extract_strided_slice %39 {offsets = [0, 256], sizes = [8, 128], strides = [1, 1]} : vector<8x512xf32> to vector<8x128xf32>
    %53 = math.tanh %52 : vector<8x128xf32>
    %54 = vector.extract_strided_slice %39 {offsets = [0, 384], sizes = [8, 128], strides = [1, 1]} : vector<8x512xf32> to vector<8x128xf32>
    %55 = arith.negf %54 : vector<8x128xf32>
    %56 = math.exp %55 : vector<8x128xf32>
    %cst_16 = arith.constant 1.000000e+00 : f32
    %57 = vector.broadcast %cst_16 : f32 to vector<8x128xf32>
    %58 = arith.addf %57, %56 : vector<8x128xf32>
    %59 = arith.divf %57, %58 : vector<8x128xf32>
    %60 = arith.mulf %51, %34 : vector<8x128xf32>
    %61 = arith.mulf %45, %53 : vector<8x128xf32>
    %62 = arith.addf %60, %61 : vector<8x128xf32>
    %63 = math.tanh %62 : vector<8x128xf32>
    %64 = arith.mulf %59, %63 : vector<8x128xf32>
    %65 = vector.extract_strided_slice %6 {offsets = [16, 0], sizes = [8, 512], strides = [1, 1]} : vector<64x512xf32> to vector<8x512xf32>
    %cst_17 = arith.constant dense<0.000000e+00> : vector<8x512xf32>
    %66 = tpu.matmul %64, %1, %cst_17 {dimension_numbers = #tpu.dot_dimension_numbers<[1], [0], [0], [1], [0, 0, 1, 1], [], []>} : vector<8x128xf32>, vector<128x512xf32>, vector<8x512xf32> -> vector<8x512xf32>
    %67 = arith.addf %65, %66 : vector<8x512xf32>
    %68 = vector.extract_strided_slice %67 {offsets = [0, 0], sizes = [8, 128], strides = [1, 1]} : vector<8x512xf32> to vector<8x128xf32>
    %69 = arith.negf %68 : vector<8x128xf32>
    %70 = math.exp %69 : vector<8x128xf32>
    %cst_18 = arith.constant 1.000000e+00 : f32
    %71 = vector.broadcast %cst_18 : f32 to vector<8x128xf32>
    %72 = arith.addf %71, %70 : vector<8x128xf32>
    %73 = arith.divf %71, %72 : vector<8x128xf32>
    %74 = vector.extract_strided_slice %67 {offsets = [0, 128], sizes = [8, 128], strides = [1, 1]} : vector<8x512xf32> to vector<8x128xf32>
    %75 = arith.negf %74 : vector<8x128xf32>
    %76 = math.exp %75 : vector<8x128xf32>
    %cst_19 = arith.constant 1.000000e+00 : f32
    %77 = vector.broadcast %cst_19 : f32 to vector<8x128xf32>
    %78 = arith.addf %77, %76 : vector<8x128xf32>
    %79 = arith.divf %77, %78 : vector<8x128xf32>
    %80 = vector.extract_strided_slice %67 {offsets = [0, 256], sizes = [8, 128], strides = [1, 1]} : vector<8x512xf32> to vector<8x128xf32>
    %81 = math.tanh %80 : vector<8x128xf32>
    %82 = vector.extract_strided_slice %67 {offsets = [0, 384], sizes = [8, 128], strides = [1, 1]} : vector<8x512xf32> to vector<8x128xf32>
    %83 = arith.negf %82 : vector<8x128xf32>
    %84 = math.exp %83 : vector<8x128xf32>
    %cst_20 = arith.constant 1.000000e+00 : f32
    %85 = vector.broadcast %cst_20 : f32 to vector<8x128xf32>
    %86 = arith.addf %85, %84 : vector<8x128xf32>
    %87 = arith.divf %85, %86 : vector<8x128xf32>
    %88 = arith.mulf %79, %62 : vector<8x128xf32>
    %89 = arith.mulf %73, %81 : vector<8x128xf32>
    %90 = arith.addf %88, %89 : vector<8x128xf32>
    %91 = math.tanh %90 : vector<8x128xf32>
    %92 = arith.mulf %87, %91 : vector<8x128xf32>
    %93 = vector.extract_strided_slice %6 {offsets = [24, 0], sizes = [8, 512], strides = [1, 1]} : vector<64x512xf32> to vector<8x512xf32>
    %cst_21 = arith.constant dense<0.000000e+00> : vector<8x512xf32>
    %94 = tpu.matmul %92, %1, %cst_21 {dimension_numbers = #tpu.dot_dimension_numbers<[1], [0], [0], [1], [0, 0, 1, 1], [], []>} : vector<8x128xf32>, vector<128x512xf32>, vector<8x512xf32> -> vector<8x512xf32>
    %95 = arith.addf %93, %94 : vector<8x512xf32>
    %96 = vector.extract_strided_slice %95 {offsets = [0, 0], sizes = [8, 128], strides = [1, 1]} : vector<8x512xf32> to vector<8x128xf32>
    %97 = arith.negf %96 : vector<8x128xf32>
    %98 = math.exp %97 : vector<8x128xf32>
    %cst_22 = arith.constant 1.000000e+00 : f32
    %99 = vector.broadcast %cst_22 : f32 to vector<8x128xf32>
    %100 = arith.addf %99, %98 : vector<8x128xf32>
    %101 = arith.divf %99, %100 : vector<8x128xf32>
    %102 = vector.extract_strided_slice %95 {offsets = [0, 128], sizes = [8, 128], strides = [1, 1]} : vector<8x512xf32> to vector<8x128xf32>
    %103 = arith.negf %102 : vector<8x128xf32>
    %104 = math.exp %103 : vector<8x128xf32>
    %cst_23 = arith.constant 1.000000e+00 : f32
    %105 = vector.broadcast %cst_23 : f32 to vector<8x128xf32>
    %106 = arith.addf %105, %104 : vector<8x128xf32>
    %107 = arith.divf %105, %106 : vector<8x128xf32>
    %108 = vector.extract_strided_slice %95 {offsets = [0, 256], sizes = [8, 128], strides = [1, 1]} : vector<8x512xf32> to vector<8x128xf32>
    %109 = math.tanh %108 : vector<8x128xf32>
    %110 = vector.extract_strided_slice %95 {offsets = [0, 384], sizes = [8, 128], strides = [1, 1]} : vector<8x512xf32> to vector<8x128xf32>
    %111 = arith.negf %110 : vector<8x128xf32>
    %112 = math.exp %111 : vector<8x128xf32>
    %cst_24 = arith.constant 1.000000e+00 : f32
    %113 = vector.broadcast %cst_24 : f32 to vector<8x128xf32>
    %114 = arith.addf %113, %112 : vector<8x128xf32>
    %115 = arith.divf %113, %114 : vector<8x128xf32>
    %116 = arith.mulf %107, %90 : vector<8x128xf32>
    %117 = arith.mulf %101, %109 : vector<8x128xf32>
    %118 = arith.addf %116, %117 : vector<8x128xf32>
    %119 = math.tanh %118 : vector<8x128xf32>
    %120 = arith.mulf %115, %119 : vector<8x128xf32>
    %121 = vector.extract_strided_slice %6 {offsets = [32, 0], sizes = [8, 512], strides = [1, 1]} : vector<64x512xf32> to vector<8x512xf32>
    %cst_25 = arith.constant dense<0.000000e+00> : vector<8x512xf32>
    %122 = tpu.matmul %120, %1, %cst_25 {dimension_numbers = #tpu.dot_dimension_numbers<[1], [0], [0], [1], [0, 0, 1, 1], [], []>} : vector<8x128xf32>, vector<128x512xf32>, vector<8x512xf32> -> vector<8x512xf32>
    %123 = arith.addf %121, %122 : vector<8x512xf32>
    %124 = vector.extract_strided_slice %123 {offsets = [0, 0], sizes = [8, 128], strides = [1, 1]} : vector<8x512xf32> to vector<8x128xf32>
    %125 = arith.negf %124 : vector<8x128xf32>
    %126 = math.exp %125 : vector<8x128xf32>
    %cst_26 = arith.constant 1.000000e+00 : f32
    %127 = vector.broadcast %cst_26 : f32 to vector<8x128xf32>
    %128 = arith.addf %127, %126 : vector<8x128xf32>
    %129 = arith.divf %127, %128 : vector<8x128xf32>
    %130 = vector.extract_strided_slice %123 {offsets = [0, 128], sizes = [8, 128], strides = [1, 1]} : vector<8x512xf32> to vector<8x128xf32>
    %131 = arith.negf %130 : vector<8x128xf32>
    %132 = math.exp %131 : vector<8x128xf32>
    %cst_27 = arith.constant 1.000000e+00 : f32
    %133 = vector.broadcast %cst_27 : f32 to vector<8x128xf32>
    %134 = arith.addf %133, %132 : vector<8x128xf32>
    %135 = arith.divf %133, %134 : vector<8x128xf32>
    %136 = vector.extract_strided_slice %123 {offsets = [0, 256], sizes = [8, 128], strides = [1, 1]} : vector<8x512xf32> to vector<8x128xf32>
    %137 = math.tanh %136 : vector<8x128xf32>
    %138 = vector.extract_strided_slice %123 {offsets = [0, 384], sizes = [8, 128], strides = [1, 1]} : vector<8x512xf32> to vector<8x128xf32>
    %139 = arith.negf %138 : vector<8x128xf32>
    %140 = math.exp %139 : vector<8x128xf32>
    %cst_28 = arith.constant 1.000000e+00 : f32
    %141 = vector.broadcast %cst_28 : f32 to vector<8x128xf32>
    %142 = arith.addf %141, %140 : vector<8x128xf32>
    %143 = arith.divf %141, %142 : vector<8x128xf32>
    %144 = arith.mulf %135, %118 : vector<8x128xf32>
    %145 = arith.mulf %129, %137 : vector<8x128xf32>
    %146 = arith.addf %144, %145 : vector<8x128xf32>
    %147 = math.tanh %146 : vector<8x128xf32>
    %148 = arith.mulf %143, %147 : vector<8x128xf32>
    %149 = vector.extract_strided_slice %6 {offsets = [40, 0], sizes = [8, 512], strides = [1, 1]} : vector<64x512xf32> to vector<8x512xf32>
    %cst_29 = arith.constant dense<0.000000e+00> : vector<8x512xf32>
    %150 = tpu.matmul %148, %1, %cst_29 {dimension_numbers = #tpu.dot_dimension_numbers<[1], [0], [0], [1], [0, 0, 1, 1], [], []>} : vector<8x128xf32>, vector<128x512xf32>, vector<8x512xf32> -> vector<8x512xf32>
    %151 = arith.addf %149, %150 : vector<8x512xf32>
    %152 = vector.extract_strided_slice %151 {offsets = [0, 0], sizes = [8, 128], strides = [1, 1]} : vector<8x512xf32> to vector<8x128xf32>
    %153 = arith.negf %152 : vector<8x128xf32>
    %154 = math.exp %153 : vector<8x128xf32>
    %cst_30 = arith.constant 1.000000e+00 : f32
    %155 = vector.broadcast %cst_30 : f32 to vector<8x128xf32>
    %156 = arith.addf %155, %154 : vector<8x128xf32>
    %157 = arith.divf %155, %156 : vector<8x128xf32>
    %158 = vector.extract_strided_slice %151 {offsets = [0, 128], sizes = [8, 128], strides = [1, 1]} : vector<8x512xf32> to vector<8x128xf32>
    %159 = arith.negf %158 : vector<8x128xf32>
    %160 = math.exp %159 : vector<8x128xf32>
    %cst_31 = arith.constant 1.000000e+00 : f32
    %161 = vector.broadcast %cst_31 : f32 to vector<8x128xf32>
    %162 = arith.addf %161, %160 : vector<8x128xf32>
    %163 = arith.divf %161, %162 : vector<8x128xf32>
    %164 = vector.extract_strided_slice %151 {offsets = [0, 256], sizes = [8, 128], strides = [1, 1]} : vector<8x512xf32> to vector<8x128xf32>
    %165 = math.tanh %164 : vector<8x128xf32>
    %166 = vector.extract_strided_slice %151 {offsets = [0, 384], sizes = [8, 128], strides = [1, 1]} : vector<8x512xf32> to vector<8x128xf32>
    %167 = arith.negf %166 : vector<8x128xf32>
    %168 = math.exp %167 : vector<8x128xf32>
    %cst_32 = arith.constant 1.000000e+00 : f32
    %169 = vector.broadcast %cst_32 : f32 to vector<8x128xf32>
    %170 = arith.addf %169, %168 : vector<8x128xf32>
    %171 = arith.divf %169, %170 : vector<8x128xf32>
    %172 = arith.mulf %163, %146 : vector<8x128xf32>
    %173 = arith.mulf %157, %165 : vector<8x128xf32>
    %174 = arith.addf %172, %173 : vector<8x128xf32>
    %175 = math.tanh %174 : vector<8x128xf32>
    %176 = arith.mulf %171, %175 : vector<8x128xf32>
    %177 = vector.extract_strided_slice %6 {offsets = [48, 0], sizes = [8, 512], strides = [1, 1]} : vector<64x512xf32> to vector<8x512xf32>
    %cst_33 = arith.constant dense<0.000000e+00> : vector<8x512xf32>
    %178 = tpu.matmul %176, %1, %cst_33 {dimension_numbers = #tpu.dot_dimension_numbers<[1], [0], [0], [1], [0, 0, 1, 1], [], []>} : vector<8x128xf32>, vector<128x512xf32>, vector<8x512xf32> -> vector<8x512xf32>
    %179 = arith.addf %177, %178 : vector<8x512xf32>
    %180 = vector.extract_strided_slice %179 {offsets = [0, 0], sizes = [8, 128], strides = [1, 1]} : vector<8x512xf32> to vector<8x128xf32>
    %181 = arith.negf %180 : vector<8x128xf32>
    %182 = math.exp %181 : vector<8x128xf32>
    %cst_34 = arith.constant 1.000000e+00 : f32
    %183 = vector.broadcast %cst_34 : f32 to vector<8x128xf32>
    %184 = arith.addf %183, %182 : vector<8x128xf32>
    %185 = arith.divf %183, %184 : vector<8x128xf32>
    %186 = vector.extract_strided_slice %179 {offsets = [0, 128], sizes = [8, 128], strides = [1, 1]} : vector<8x512xf32> to vector<8x128xf32>
    %187 = arith.negf %186 : vector<8x128xf32>
    %188 = math.exp %187 : vector<8x128xf32>
    %cst_35 = arith.constant 1.000000e+00 : f32
    %189 = vector.broadcast %cst_35 : f32 to vector<8x128xf32>
    %190 = arith.addf %189, %188 : vector<8x128xf32>
    %191 = arith.divf %189, %190 : vector<8x128xf32>
    %192 = vector.extract_strided_slice %179 {offsets = [0, 256], sizes = [8, 128], strides = [1, 1]} : vector<8x512xf32> to vector<8x128xf32>
    %193 = math.tanh %192 : vector<8x128xf32>
    %194 = vector.extract_strided_slice %179 {offsets = [0, 384], sizes = [8, 128], strides = [1, 1]} : vector<8x512xf32> to vector<8x128xf32>
    %195 = arith.negf %194 : vector<8x128xf32>
    %196 = math.exp %195 : vector<8x128xf32>
    %cst_36 = arith.constant 1.000000e+00 : f32
    %197 = vector.broadcast %cst_36 : f32 to vector<8x128xf32>
    %198 = arith.addf %197, %196 : vector<8x128xf32>
    %199 = arith.divf %197, %198 : vector<8x128xf32>
    %200 = arith.mulf %191, %174 : vector<8x128xf32>
    %201 = arith.mulf %185, %193 : vector<8x128xf32>
    %202 = arith.addf %200, %201 : vector<8x128xf32>
    %203 = math.tanh %202 : vector<8x128xf32>
    %204 = arith.mulf %199, %203 : vector<8x128xf32>
    %205 = vector.extract_strided_slice %6 {offsets = [56, 0], sizes = [8, 512], strides = [1, 1]} : vector<64x512xf32> to vector<8x512xf32>
    %cst_37 = arith.constant dense<0.000000e+00> : vector<8x512xf32>
    %206 = tpu.matmul %204, %1, %cst_37 {dimension_numbers = #tpu.dot_dimension_numbers<[1], [0], [0], [1], [0, 0, 1, 1], [], []>} : vector<8x128xf32>, vector<128x512xf32>, vector<8x512xf32> -> vector<8x512xf32>
    %207 = arith.addf %205, %206 : vector<8x512xf32>
    %208 = vector.extract_strided_slice %207 {offsets = [0, 0], sizes = [8, 128], strides = [1, 1]} : vector<8x512xf32> to vector<8x128xf32>
    %209 = arith.negf %208 : vector<8x128xf32>
    %210 = math.exp %209 : vector<8x128xf32>
    %cst_38 = arith.constant 1.000000e+00 : f32
    %211 = vector.broadcast %cst_38 : f32 to vector<8x128xf32>
    %212 = arith.addf %211, %210 : vector<8x128xf32>
    %213 = arith.divf %211, %212 : vector<8x128xf32>
    %214 = vector.extract_strided_slice %207 {offsets = [0, 128], sizes = [8, 128], strides = [1, 1]} : vector<8x512xf32> to vector<8x128xf32>
    %215 = arith.negf %214 : vector<8x128xf32>
    %216 = math.exp %215 : vector<8x128xf32>
    %cst_39 = arith.constant 1.000000e+00 : f32
    %217 = vector.broadcast %cst_39 : f32 to vector<8x128xf32>
    %218 = arith.addf %217, %216 : vector<8x128xf32>
    %219 = arith.divf %217, %218 : vector<8x128xf32>
    %220 = vector.extract_strided_slice %207 {offsets = [0, 256], sizes = [8, 128], strides = [1, 1]} : vector<8x512xf32> to vector<8x128xf32>
    %221 = math.tanh %220 : vector<8x128xf32>
    %222 = vector.extract_strided_slice %207 {offsets = [0, 384], sizes = [8, 128], strides = [1, 1]} : vector<8x512xf32> to vector<8x128xf32>
    %223 = arith.negf %222 : vector<8x128xf32>
    %224 = math.exp %223 : vector<8x128xf32>
    %cst_40 = arith.constant 1.000000e+00 : f32
    %225 = vector.broadcast %cst_40 : f32 to vector<8x128xf32>
    %226 = arith.addf %225, %224 : vector<8x128xf32>
    %227 = arith.divf %225, %226 : vector<8x128xf32>
    %228 = arith.mulf %219, %202 : vector<8x128xf32>
    %229 = arith.mulf %213, %221 : vector<8x128xf32>
    %230 = arith.addf %228, %229 : vector<8x128xf32>
    %231 = math.tanh %230 : vector<8x128xf32>
    %232 = arith.mulf %227, %231 : vector<8x128xf32>
    %c0_41 = arith.constant 0 : index
    %c0_42 = arith.constant 0 : index
    %233 = vector.load %arg4[%c0_41, %c0_42] : memref<128x128xf32, #tpu.memory_space<vmem>>, vector<128x128xf32>
    %cst_43 = arith.constant dense<0.000000e+00> : vector<8x128xf32>
    %234 = tpu.matmul %232, %233, %cst_43 {dimension_numbers = #tpu.dot_dimension_numbers<[1], [0], [0], [1], [0, 0, 1, 1], [], []>} : vector<8x128xf32>, vector<128x128xf32>, vector<8x128xf32> -> vector<8x128xf32>
    %c0_44 = arith.constant 0 : index
    %c0_45 = arith.constant 0 : index
    %235 = vector.load %arg5[%c0_44, %c0_45] : memref<1x128xf32, #tpu.memory_space<vmem>>, vector<1x128xf32>
    %236 = vector.broadcast %235 : vector<1x128xf32> to vector<8x128xf32>
    %237 = arith.addf %234, %236 : vector<8x128xf32>
    %c0_46 = arith.constant 0 : index
    %c0_47 = arith.constant 0 : index
    %238 = vector.load %arg6[%c0_46, %c0_47] : memref<8x128xf32, #tpu.memory_space<vmem>>, vector<8x128xf32>
    tpu.vector_store %arg6[%c0_46, %c0_47], %237 {strides = array<i32>} : memref<8x128xf32, #tpu.memory_space<vmem>>, vector<8x128xf32>,
    return
  }
}

</mosaic_0001>

<bundles_post_ra>
// kernel: wildfire_severity_lstm_forward.1
= control target key start
LH: loop header
LB: loop body
LE: loop exit
PB: predicated region body
PF: predicated region fallthrough
CT: control target
= control target key end

     0   :  { %11 = vsyncpa [#allocation3], 0  ;;  %s2713_s21 = smov [#allocation2]   ;;  %s3296_s0 = inlined_call_operand.vmem [shape: f32[64,4], index: 0, kind: input, shape index: {}]   ;;  %s3297_s1 = inlined_call_operand.vmem [shape: f32[4,512], index: 1, kind: input, shape index: {}]   ;;  %s3298_s2 = inlined_call_operand.hbm [shape: f32[128,512], index: 2, kind: input, shape index: {}]   ;;  %s3299_s3 = inlined_call_operand.vmem [shape: f32[1,512], index: 3, kind: input, shape index: {}]   ;;  %s3300_s4 = inlined_call_operand.vmem [shape: f32[128,128], index: 4, kind: input, shape index: {}]   ;;  %s3301_s5 = inlined_call_operand.vmem [shape: f32[1,128], index: 5, kind: input, shape index: {}]   ;;  %s3302_s6 = inlined_call_operand.vmem [shape: f32[8,128], index: 6, kind: output, shape index: {}]  }
   0x1   :  { %s21_s22 = sshll.u32 %s2713_s21, 4  ;;  %s2689_s25 = scalar_lea.hbm %s3298_s2, 8192  ;;  %s22_s22 = int_to_ptr.vmem [resolvable:$true] %s21_s22 }
   0x2   :  { %p2690_p0 = scmp.ne.s32.totalorder %s3298_s2, %s2689_s25  ;;  %p2693_p1 = scmp.lt.u32.totalorder %s2689_s25, %s3298_s2 }
   0x4   :  { %p2695_p2 = pnand %p2693_p1, %p2690_p0 }
   0x6   :  { %2698 = shalt.err (!%p2695_p2)
}
   0x7   :  { %s2699_s30 = scalar_lea.vmem %s22_s22, 8192  ;;  %p2704_p4 = scmp.lt.s32.totalorder %s22_s22, %s22_s22 }
   0x8   :  { %p2700_p3 = scmp.ne.s32.totalorder %s22_s22, %s2699_s30  ;;  %p2705_p5 = scmp.lt.s32.totalorder %s2699_s30, %s2699_s30 }
   0xa   :  { %p2706_p6 = por %p2705_p5, %p2704_p4 }
   0xc   :  { %p2707_p7 = pnand %p2706_p6, %p2700_p3 }
   0xe   :  { %2710 = shalt.err (!%p2707_p7)
}
   0xf   :  { %s2714_s7 = smov 512   ;;  %s2715_s8 = smov 32  }
  0x10   :  { %27 = dma.hbm_to_vmem [thread:$0]  %s3298_s2, 8192, %s22_s22, [#allocation3], %s2714_s7, %s2714_s7, %s2715_s8  }
  0x11   :  { %2711 = dma.done.wait [#allocation3], 8192  }
  0x12   :  { %2712 = vsyncadd [#allocation3], 4294959104  ;;  %v2716_v0 = vmov 0.0   ;;  %v37_v1 = vld [vmem:[%s3297_s1] sm:$0xff]  ;;  %vm162_vm0 = vcmask 1043456   ;;  %v38_v2 = vld [vmem:[%s3297_s1 + $0x8] sm:$0xff] }
  0x13   :  { %235 = vmatprep.mubr.f32.mxu0 %v2716_v0  ;;  %348 = vmatprep.mubr.f32.mxu1 %v2716_v0  ;;  %v104_v3 = vld [vmem:[%s3296_s0] sm:$0xff]  ;;  %v135_v4 = vcombine.high %v37_v1, %v37_v1  ;;  %v136_v5 = vcombine.high %v38_v2, %v38_v2  ;;  %v40_v6 = vld [vmem:[#allocation2 + $0x8] sm:$0xff]  ;;  %v42_v8 = vld [vmem:[#allocation2 + $0x18] sm:$0xff]  ;;  %vm137_vm1 = vcmask 31744   ;;  %vm2718_vm2 = vmmov 0  }
  0x14   :  { %v44_v7 = vld [vmem:[#allocation2 + $0x28] sm:$0xff]  ;;  %v46_v10 = vld [vmem:[#allocation2 + $0x38] sm:$0xff]  ;;  %v39_v11 = vld [vmem:[#allocation2] sm:$0xff] }
  0x15   :  { %v2777_v9 = vpack.c.bf16 %v44_v7, %v40_v6  ;;  %v43_v12 = vld [vmem:[#allocation2 + $0x20] sm:$0xff]  ;;  %1856 = vmatprep.subr.msk.mxu0 %vm162_vm0, %v135_v4  ;;  %1866 = vmatprep.subr.msk.mxu1 %vm162_vm0, %v136_v5  ;;  %v2781_v13 = vpack.c.bf16 %v46_v10, %v42_v8  ;;  %v41_v15 = vld [vmem:[#allocation2 + $0x10] sm:$0xff]  ;;  %v48_v18 = vld [vmem:[#allocation2 + $0x48] sm:$0xff] }
  0x16   :  { %v2783_v14 = vpack.c.bf16 %v43_v12, %v39_v11  ;;  %v45_v16 = vld [vmem:[#allocation2 + $0x30] sm:$0xff]  ;;  %1857 = vmatpush1.msk.msra.mxu0 %vm162_vm0, %v37_v1  ;;  %1867 = vmatpush1.msk.msra.mxu1 %vm162_vm0, %v38_v2  ;;  %v52_v19 = vld [vmem:[#allocation2 + $0x68] sm:$0xff]  ;;  %v50_v20 = vld [vmem:[#allocation2 + $0x58] sm:$0xff] }
  0x17   :  { %v2787_v17 = vpack.c.bf16 %v45_v16, %v41_v15  ;;  %1858 = vmatmul.mubr.msk.f32.vlgmr.msra.gmra.mrb[0].mxu0 %vm137_vm1, %v104_v3  ;;  %1868 = vmatmul.mubr.msk.f32.vlgmr.msra.gmra.mrb[0].mxu1 %vm137_vm1, %v104_v3  ;;  %v54_v21 = vld [vmem:[#allocation2 + $0x78] sm:$0xff]  ;;  %v47_v22 = vld [vmem:[#allocation2 + $0x40] sm:$0xff]  ;;  %v105_v24 = vld [vmem:[%s3296_s0 + $0x8] sm:$0xff]  ;;  %v2796_v25 = vpack.c.bf16 %v52_v19, %v48_v18 }
  0x18   :  { %v51_v23 = vld [vmem:[#allocation2 + $0x60] sm:$0xff]  ;;  %1954 = vmatprep.subr.bf16.mxu0 %v2777_v9  ;;  %1986 = vmatprep.subr.bf16.mxu1 %v2781_v13  ;;  %v2798_v26 = vpack.c.bf16 %v54_v21, %v50_v20  ;;  %v49_v27 = vld [vmem:[#allocation2 + $0x50] sm:$0xff]  ;;  %v56_v31 = vld [vmem:[#allocation2 + $0x88] sm:$0xff] }
  0x19   :  { %v53_v28 = vld [vmem:[#allocation2 + $0x70] sm:$0xff]  ;;  %1956 = vmatpush1.bf16.msra.mxu0 %v2783_v14  ;;  %1988 = vmatpush1.bf16.msra.mxu1 %v2787_v17  ;;  %v2802_v29 = vpack.c.bf16 %v51_v23, %v47_v22  ;;  %v60_v32 = vld [vmem:[#allocation2 + $0xa8] sm:$0xff]  ;;  %v58_v33 = vld [vmem:[#allocation2 + $0x98] sm:$0xff] }
  0x1a   :  { %v2804_v30 = vpack.c.bf16 %v53_v28, %v49_v27  ;;  %241 = vmatprep.mubr.f32.mxu0 %v2716_v0  ;;  %354 = vmatprep.mubr.f32.mxu1 %v2716_v0  ;;  %v62_v34 = vld [vmem:[#allocation2 + $0xb8] sm:$0xff]  ;;  %v55_v35 = vld [vmem:[#allocation2 + $0x80] sm:$0xff]  ;;  %v57_v37 = vld [vmem:[#allocation2 + $0x90] sm:$0xff]  ;;  %v2815_v40 = vpack.c.bf16 %v60_v32, %v56_v31 }
  0x1b   :  { %v59_v36 = vld [vmem:[#allocation2 + $0xa0] sm:$0xff]  ;;  %1859 = vmatmul.mubr.msk.f32.gmra.mrb[2].mxu0 %vm137_vm1, %v105_v24  ;;  %1869 = vmatmul.mubr.msk.f32.gmra.mrb[2].mxu1 %vm137_vm1, %v105_v24  ;;  %v61_v38 = vld [vmem:[#allocation2 + $0xb0] sm:$0xff]  ;;  %v2817_v41 = vpack.c.bf16 %v62_v34, %v58_v33  ;;  %v64_v42 = vld [vmem:[#allocation2 + $0xc8] sm:$0xff] }
  0x1c   :  { %1958 = vmatprep.subr.bf16.mxu0 %v2796_v25  ;;  %1990 = vmatprep.subr.bf16.mxu1 %v2798_v26  ;;  %v106_v39 = vld [vmem:[%s3296_s0 + $0x10] sm:$0xff]  ;;  %v68_v43 = vld [vmem:[#allocation2 + $0xe8] sm:$0xff]  ;;  %v2821_v44 = vpack.c.bf16 %v59_v36, %v55_v35  ;;  %v2823_v45 = vpack.c.bf16 %v61_v38, %v57_v37  ;;  %v66_v46 = vld [vmem:[#allocation2 + $0xd8] sm:$0xff] }
  0x1d   :  { %1960 = vmatpush1.bf16.msra.mxu0 %v2802_v29  ;;  %1992 = vmatpush1.bf16.msra.mxu1 %v2804_v30  ;;  %v70_v47 = vld [vmem:[#allocation2 + $0xf8] sm:$0xff]  ;;  %v63_v48 = vld [vmem:[#allocation2 + $0xc0] sm:$0xff]  ;;  %v65_v50 = vld [vmem:[#allocation2 + $0xd0] sm:$0xff]  ;;  %v2834_v53 = vpack.c.bf16 %v68_v43, %v64_v42 }
  0x1e   :  { %247 = vmatprep.mubr.f32.mxu0 %v2716_v0  ;;  %360 = vmatprep.mubr.f32.mxu1 %v2716_v0  ;;  %v67_v49 = vld [vmem:[#allocation2 + $0xe0] sm:$0xff]  ;;  %v69_v51 = vld [vmem:[#allocation2 + $0xf0] sm:$0xff]  ;;  %v107_v52 = vld [vmem:[%s3296_s0 + $0x18] sm:$0xff]  ;;  %v2836_v54 = vpack.c.bf16 %v70_v47, %v66_v46 }
  0x1f   :  { %1860 = vmatmul.mubr.msk.f32.gmra.mrb[4].mxu0 %vm137_vm1, %v106_v39  ;;  %1870 = vmatmul.mubr.msk.f32.gmra.mrb[4].mxu1 %vm137_vm1, %v106_v39  ;;  %v72_v55 = vld [vmem:[#allocation2 + $0x108] sm:$0xff]  ;;  %v2840_v57 = vpack.c.bf16 %v67_v49, %v63_v48  ;;  %v2842_v58 = vpack.c.bf16 %v69_v51, %v65_v50  ;;  %v74_v59 = vld [vmem:[#allocation2 + $0x118] sm:$0xff]  ;;  %v71_v61 = vld [vmem:[#allocation2 + $0x100] sm:$0xff] }
  0x20   :  { %1962 = vmatprep.subr.bf16.mxu0 %v2815_v40  ;;  %1994 = vmatprep.subr.bf16.mxu1 %v2817_v41  ;;  %v76_v56 = vld [vmem:[#allocation2 + $0x128] sm:$0xff]  ;;  %v78_v60 = vld [vmem:[#allocation2 + $0x138] sm:$0xff]  ;;  %v75_v62 = vld [vmem:[#allocation2 + $0x120] sm:$0xff] }
  0x21   :  { %1964 = vmatpush1.bf16.msra.mxu0 %v2821_v44  ;;  %1996 = vmatpush1.bf16.msra.mxu1 %v2823_v45  ;;  %v73_v63 = vld [vmem:[#allocation2 + $0x110] sm:$0xff]  ;;  %v108_v2 = vld [vmem:[%s3296_s0 + $0x20] sm:$0xff]  ;;  %v2853_v3 = vpack.c.bf16 %v76_v56, %v72_v55  ;;  %v2855_v4 = vpack.c.bf16 %v78_v60, %v74_v59  ;;  %v80_v5 = vld [vmem:[#allocation2 + $0x148] sm:$0xff]  ;;  %v2859_v7 = vpack.c.bf16 %v75_v62, %v71_v61  ;;  %v113_v62 = vlaneseq }
  0x22   :  { %253 = vmatprep.mubr.f32.mxu0 %v2716_v0  ;;  %366 = vmatprep.mubr.f32.mxu1 %v2716_v0  ;;  %v77_v1 = vld [vmem:[#allocation2 + $0x130] sm:$0xff]  ;;  %v84_v6 = vld [vmem:[#allocation2 + $0x168] sm:$0xff]  ;;  %v82_v10 = vld [vmem:[#allocation2 + $0x158] sm:$0xff] }
  0x23   :  { %1861 = vmatmul.mubr.msk.f32.gmra.mrb[6].mxu0 %vm137_vm1, %v107_v52  ;;  %1871 = vmatmul.mubr.msk.f32.gmra.mrb[6].mxu1 %vm137_vm1, %v107_v52  ;;  %v2861_v8 = vpack.c.bf16 %v77_v1, %v73_v63  ;;  %v86_v11 = vld [vmem:[#allocation2 + $0x178] sm:$0xff]  ;;  %v79_v12 = vld [vmem:[#allocation2 + $0x140] sm:$0xff]  ;;  %v81_v16 = vld [vmem:[#allocation2 + $0x150] sm:$0xff]  ;;  %v2872_v20 = vpack.c.bf16 %v84_v6, %v80_v5  ;;  %v114_v63 = vshrl.u32 %v113_v62, 7 }
  0x24   :  { %1966 = vmatprep.subr.bf16.mxu0 %v2834_v53  ;;  %1998 = vmatprep.subr.bf16.mxu1 %v2836_v54  ;;  %v83_v15 = vld [vmem:[#allocation2 + $0x160] sm:$0xff]  ;;  %v85_v18 = vld [vmem:[#allocation2 + $0x170] sm:$0xff]  ;;  %v109_v19 = vld [vmem:[%s3296_s0 + $0x28] sm:$0xff]  ;;  %v2874_v21 = vpack.c.bf16 %v86_v11, %v82_v10 }
  0x25   :  { %1968 = vmatpush1.bf16.msra.mxu0 %v2840_v57  ;;  %2000 = vmatpush1.bf16.msra.mxu1 %v2842_v58  ;;  %v88_v22 = vld [vmem:[#allocation2 + $0x188] sm:$0xff]  ;;  %v2878_v24 = vpack.c.bf16 %v83_v15, %v79_v12  ;;  %v2880_v27 = vpack.c.bf16 %v85_v18, %v81_v16  ;;  %v90_v28 = vld [vmem:[#allocation2 + $0x198] sm:$0xff]  ;;  %v87_v32 = vld [vmem:[#allocation2 + $0x180] sm:$0xff]  ;;  %v115_v1 = vsub.s32 0, %v114_v63  ;;  %v119_v5 = vsub.s32 1, %v114_v63 }
  0x26   :  { %259 = vmatprep.mubr.f32.mxu0 %v2716_v0  ;;  %372 = vmatprep.mubr.f32.mxu1 %v2716_v0  ;;  %v92_v23 = vld [vmem:[#allocation2 + $0x1a8] sm:$0xff]  ;;  %v94_v31 = vld [vmem:[#allocation2 + $0x1b8] sm:$0xff]  ;;  %v91_v33 = vld [vmem:[#allocation2 + $0x1a0] sm:$0xff]  ;;  %v127_v15 = vsub.s32 3, %v114_v63 }
  0x27   :  { %1862 = vmatmul.mubr.msk.f32.gmra.mrb[8].mxu0 %vm137_vm1, %v108_v2  ;;  %1872 = vmatmul.mubr.msk.f32.gmra.mrb[8].mxu1 %vm137_vm1, %v108_v2  ;;  %v89_v34 = vld [vmem:[#allocation2 + $0x190] sm:$0xff]  ;;  %v2891_v37 = vpack.c.bf16 %v92_v23, %v88_v22  ;;  %v2893_v38 = vpack.c.bf16 %v94_v31, %v90_v28  ;;  %v96_v39 = vld [vmem:[#allocation2 + $0x1c8] sm:$0xff]  ;;  %v2897_v43 = vpack.c.bf16 %v91_v33, %v87_v32  ;;  %v98_v47 = vld [vmem:[#allocation2 + $0x1d8] sm:$0xff]  ;;  %v123_v32 = vsub.s32 2, %v114_v63 }
  0x28   :  { %1970 = vmatprep.subr.bf16.mxu0 %v2853_v3  ;;  %2002 = vmatprep.subr.bf16.mxu1 %v2855_v4  ;;  %v93_v35 = vld [vmem:[#allocation2 + $0x1b0] sm:$0xff]  ;;  %v100_v42 = vld [vmem:[#allocation2 + $0x1e8] sm:$0xff]  ;;  %v102_v48 = vld [vmem:[#allocation2 + $0x1f8] sm:$0xff] }
  0x29   :  { %1972 = vmatpush1.bf16.msra.mxu0 %v2859_v7  ;;  %2004 = vmatpush1.bf16.msra.mxu1 %v2861_v8  ;;  %v110_v36 = vld [vmem:[%s3296_s0 + $0x30] sm:$0xff]  ;;  %v2899_v46 = vpack.c.bf16 %v93_v35, %v89_v34  ;;  %v95_v49 = vld [vmem:[#allocation2 + $0x1c0] sm:$0xff]  ;;  %v111_v55 = vld [vmem:[%s3296_s0 + $0x38] sm:$0xff]  ;;  %v2910_v56 = vpack.c.bf16 %v100_v42, %v96_v39  ;;  %v2912_v59 = vpack.c.bf16 %v102_v48, %v98_v47 }
  0x2a   :  { %265 = vmatprep.mubr.f32.mxu0 %v2716_v0  ;;  %378 = vmatprep.mubr.f32.mxu1 %v2716_v0  ;;  %v99_v50 = vld [vmem:[#allocation2 + $0x1e0] sm:$0xff]  ;;  %v97_v51 = vld [vmem:[#allocation2 + $0x1d0] sm:$0xff] }
  0x2b   :  { %1863 = vmatmul.mubr.msk.f32.gmra.mrb[10].mxu0 %vm137_vm1, %v109_v19  ;;  %1873 = vmatmul.mubr.msk.f32.gmra.mrb[10].mxu1 %vm137_vm1, %v109_v19  ;;  %v101_v52 = vld [vmem:[#allocation2 + $0x1f0] sm:$0xff]  ;;  %v2916_v60 = vpack.c.bf16 %v99_v50, %v95_v49  ;;  %v103_v2 = vld [vmem:[%s3299_s3] sm:$0xf] }
  0x2c   :  { %1974 = vmatprep.subr.bf16.mxu0 %v2872_v20  ;;  %2006 = vmatprep.subr.bf16.mxu1 %v2874_v21  ;;  %v2918_v61 = vpack.c.bf16 %v101_v52, %v97_v51  ;;  %v2971_v6 = vrot.slane %v103_v2, %v115_v1  ;;  %v2973_v10 = vrot.slane %v103_v2, %v119_v5 }
  0x2d   :  { %1976 = vmatpush1.bf16.msra.mxu0 %v2878_v24  ;;  %2008 = vmatpush1.bf16.msra.mxu1 %v2880_v27  ;;  %v2977_v31 = vrot.slane %v103_v2, %v127_v15  ;;  %v2980_v34 = vrot.slane %v103_v2, %v123_v32 }
  0x2e   :  { %271 = vmatprep.mubr.f32.mxu0 %v2716_v0  ;;  %384 = vmatprep.mubr.f32.mxu1 %v2716_v0 }
  0x2f   :  { %1864 = vmatmul.mubr.msk.f32.gmra.mrb[12].mxu0 %vm137_vm1, %v110_v36  ;;  %1874 = vmatmul.mubr.msk.f32.gmra.mrb[12].mxu1 %vm137_vm1, %v110_v36 }
  0x30   :  { %1978 = vmatprep.subr.bf16.mxu0 %v2891_v37  ;;  %2010 = vmatprep.subr.bf16.mxu1 %v2893_v38 }
  0x31   :  { %1980 = vmatpush1.bf16.msra.mxu0 %v2897_v43  ;;  %2012 = vmatpush1.bf16.msra.mxu1 %v2899_v46 }
  0x32   :  { %277 = vmatprep.mubr.f32.mxu0 %v2716_v0  ;;  %390 = vmatprep.mubr.f32.mxu1 %v2716_v0 }
  0x33   :  { %1865 = vmatmul.mubr.msk.f32.gmra.mrb[14].mxu0 %vm137_vm1, %v111_v55  ;;  %1875 = vmatmul.mubr.msk.f32.gmra.mrb[14].mxu1 %vm137_vm1, %v111_v55 }
  0x34   :  { %1982 = vmatprep.subr.bf16.mxu0 %v2910_v56  ;;  %2014 = vmatprep.subr.bf16.mxu1 %v2912_v59 }
  0x35   :  { %1984 = vmatpush1.bf16.msra.mxu0 %v2916_v60  ;;  %2016 = vmatpush1.bf16.msra.mxu1 %v2918_v61 }
  0x36   :  { %461 = vmatprep.mubr.f32.mxu0 %v2716_v0  ;;  %532 = vmatprep.mubr.f32.mxu1 %v2716_v0 }
  0x37   :  { %2018 = vmatprep.subr.bf16.mxu0 %v2777_v9  ;;  %2050 = vmatprep.subr.bf16.mxu1 %v2781_v13 }
  0x38   :  { %462 = vmatmul.mubr.f32.vlgmr.msra.gmra.mrb[0].mxu0 %v2716_v0  ;;  %533 = vmatmul.mubr.f32.vlgmr.msra.gmra.mrb[0].mxu1 %v2716_v0 }
  0x39   :  { %2020 = vmatpush1.bf16.msra.mxu0 %v2783_v14  ;;  %2052 = vmatpush1.bf16.msra.mxu1 %v2787_v17 }
  0x3a   :  { %2022 = vmatprep.subr.bf16.mxu0 %v2796_v25  ;;  %2054 = vmatprep.subr.bf16.mxu1 %v2798_v26 }
  0x3b   :  { %631 = vmatprep.mubr.f32.mxu0 %v2716_v0  ;;  %702 = vmatprep.mubr.f32.mxu1 %v2716_v0 }
  0x3d   :  { %2024 = vmatpush1.bf16.msra.mxu0 %v2802_v29  ;;  %2056 = vmatpush1.bf16.msra.mxu1 %v2804_v30 }
  0x3e   :  { %2026 = vmatprep.subr.bf16.mxu0 %v2815_v40  ;;  %2058 = vmatprep.subr.bf16.mxu1 %v2817_v41 }
  0x41   :  { %2028 = vmatpush1.bf16.msra.mxu0 %v2821_v44  ;;  %2060 = vmatpush1.bf16.msra.mxu1 %v2823_v45 }
  0x42   :  { %2030 = vmatprep.subr.bf16.mxu0 %v2834_v53  ;;  %2062 = vmatprep.subr.bf16.mxu1 %v2836_v54 }
  0x45   :  { %2032 = vmatpush1.bf16.msra.mxu0 %v2840_v57  ;;  %2064 = vmatpush1.bf16.msra.mxu1 %v2842_v58 }
  0x46   :  { %2034 = vmatprep.subr.bf16.mxu0 %v2853_v3  ;;  %2066 = vmatprep.subr.bf16.mxu1 %v2855_v4 }
  0x49   :  { %2036 = vmatpush1.bf16.msra.mxu0 %v2859_v7  ;;  %2068 = vmatpush1.bf16.msra.mxu1 %v2861_v8 }
  0x4a   :  { %2038 = vmatprep.subr.bf16.mxu0 %v2872_v20  ;;  %2070 = vmatprep.subr.bf16.mxu1 %v2874_v21 }
  0x4d   :  { %2040 = vmatpush1.bf16.msra.mxu0 %v2878_v24  ;;  %2072 = vmatpush1.bf16.msra.mxu1 %v2880_v27 }
  0x4e   :  { %2042 = vmatprep.subr.bf16.mxu0 %v2891_v37  ;;  %2074 = vmatprep.subr.bf16.mxu1 %v2893_v38 }
  0x51   :  { %2044 = vmatpush1.bf16.msra.mxu0 %v2897_v43  ;;  %2076 = vmatpush1.bf16.msra.mxu1 %v2899_v46 }
  0x52   :  { %2046 = vmatprep.subr.bf16.mxu0 %v2910_v56  ;;  %2078 = vmatprep.subr.bf16.mxu1 %v2912_v59 }
  0x55   :  { %2048 = vmatpush1.bf16.msra.mxu0 %v2916_v60  ;;  %2080 = vmatpush1.bf16.msra.mxu1 %v2918_v61 }
  0x56   :  { %2082 = vmatprep.subr.bf16.mxu0 %v2777_v9  ;;  %2114 = vmatprep.subr.bf16.mxu1 %v2781_v13 }
 0x10b   :  { %v463_v11 = vpop.f32.mrb[0].mxu0  ;;  %v534_v12 = vpop.f32.mrb[0].mxu1 }
 0x10c   :  { %v2489_v16 = vadd.f32 %v463_v11, %v2971_v6  ;;  %v465_v18 = vpop.f32.mrb[1].mxu0  ;;  %v536_v19 = vpop.f32.mrb[1].mxu1  ;;  %v2505_v36 = vadd.f32 %v534_v12, %v2980_v34 }
 0x10d   :  { %v2490_v22 = vadd.f32 %v465_v18, %v2973_v10  ;;  %v2506_v33 = vadd.f32 %v536_v19, %v2977_v31 }
 0x10e   :  { %v1876_v23 = vmul.f32 -1.442695, %v2489_v16 }
 0x10f   :  { %v1877_v28 = vmul.f32 -1.442695, %v2490_v22  ;;  %v1878_v35 = vmul.f32 -1.442695, %v2506_v33 }
 0x110   :  { %2561 = vpow2.f32 %v1876_v23 }
 0x111   :  { %2563 = vpow2.f32 %v1877_v28 }
 0x112   :  { %2565 = vpow2.f32 %v1878_v35 }
 0x113   :  { %2567 = vtanh.f32 %v2505_v36 }
 0x11a   :  { %v2562_v39 = vpop.eup %2561 }
 0x11b   :  { %v2564_v42 = vpop.eup %2563  ;;  %v546_v47 = vadd.f32 1.0, %v2562_v39 }
 0x11c   :  { %v552_v48 = vadd.f32 1.0, %v2564_v42  ;;  %v2566_v49 = vpop.eup %2565 }
 0x11d   :  { %2569 = vrcp.f32 %v546_v47  ;;  %v2568_v50 = vpop.eup %2567  ;;  %v559_v62 = vadd.f32 1.0, %v2566_v49 }
 0x11e   :  { %2571 = vrcp.f32 %v552_v48 }
 0x11f   :  { %2573 = vrcp.f32 %v559_v62 }
 0x127   :  { %v2570_v51 = vpop.eup %2569 }
 0x128   :  { %v2572_v52 = vpop.eup %2571  ;;  %v563_v55 = vmul.f32 %v2570_v51, %v2568_v50 }
 0x129   :  { %v562_v63 = vmul.f32 0.0, %v2572_v52  ;;  %v2574_v2 = vpop.eup %2573 }
 0x12b   :  { %v2983_v1 = vadd.f32 %v563_v55, %v562_v63 }
 0x12d   :  { %2575 = vtanh.f32 %v2983_v1 }
 0x137   :  { %v2576_v5 = vpop.eup %2575 }
 0x138   :  { %v566_v11 = vmul.f32 %v2576_v5, %v2574_v2 }
 0x13a   :  { %632 = vmatmul.mubr.f32.vlgmr.msra.gmra.mrb[2].mxu0 %v566_v11  ;;  %703 = vmatmul.mubr.f32.vlgmr.msra.gmra.mrb[2].mxu1 %v566_v11 }
 0x13b   :  { %2084 = vmatpush1.bf16.msra.mxu0 %v2783_v14  ;;  %2116 = vmatpush1.bf16.msra.mxu1 %v2787_v17 }
 0x13c   :  { %2086 = vmatprep.subr.bf16.mxu0 %v2796_v25  ;;  %2118 = vmatprep.subr.bf16.mxu1 %v2798_v26 }
 0x13d   :  { %801 = vmatprep.mubr.f32.mxu0 %v2716_v0  ;;  %872 = vmatprep.mubr.f32.mxu1 %v2716_v0 }
 0x13f   :  { %2088 = vmatpush1.bf16.msra.mxu0 %v2802_v29  ;;  %2120 = vmatpush1.bf16.msra.mxu1 %v2804_v30 }
 0x140   :  { %2090 = vmatprep.subr.bf16.mxu0 %v2815_v40  ;;  %2122 = vmatprep.subr.bf16.mxu1 %v2817_v41 }
 0x143   :  { %2092 = vmatpush1.bf16.msra.mxu0 %v2821_v44  ;;  %2124 = vmatpush1.bf16.msra.mxu1 %v2823_v45 }
 0x144   :  { %2094 = vmatprep.subr.bf16.mxu0 %v2834_v53  ;;  %2126 = vmatprep.subr.bf16.mxu1 %v2836_v54 }
 0x147   :  { %2096 = vmatpush1.bf16.msra.mxu0 %v2840_v57  ;;  %2128 = vmatpush1.bf16.msra.mxu1 %v2842_v58 }
 0x148   :  { %2098 = vmatprep.subr.bf16.mxu0 %v2853_v3  ;;  %2130 = vmatprep.subr.bf16.mxu1 %v2855_v4 }
 0x14b   :  { %2100 = vmatpush1.bf16.msra.mxu0 %v2859_v7  ;;  %2132 = vmatpush1.bf16.msra.mxu1 %v2861_v8 }
 0x14c   :  { %2102 = vmatprep.subr.bf16.mxu0 %v2872_v20  ;;  %2134 = vmatprep.subr.bf16.mxu1 %v2874_v21 }
 0x14f   :  { %2104 = vmatpush1.bf16.msra.mxu0 %v2878_v24  ;;  %2136 = vmatpush1.bf16.msra.mxu1 %v2880_v27 }
 0x150   :  { %2106 = vmatprep.subr.bf16.mxu0 %v2891_v37  ;;  %2138 = vmatprep.subr.bf16.mxu1 %v2893_v38 }
 0x153   :  { %2108 = vmatpush1.bf16.msra.mxu0 %v2897_v43  ;;  %2140 = vmatpush1.bf16.msra.mxu1 %v2899_v46 }
 0x154   :  { %2110 = vmatprep.subr.bf16.mxu0 %v2910_v56  ;;  %2142 = vmatprep.subr.bf16.mxu1 %v2912_v59 }
 0x157   :  { %2112 = vmatpush1.bf16.msra.mxu0 %v2916_v60  ;;  %2144 = vmatpush1.bf16.msra.mxu1 %v2918_v61 }
 0x158   :  { %2146 = vmatprep.subr.bf16.mxu0 %v2777_v9  ;;  %2178 = vmatprep.subr.bf16.mxu1 %v2781_v13 }
 0x20d   :  { %v633_v12 = vpop.f32.mrb[2].mxu0  ;;  %v704_v15 = vpop.f32.mrb[2].mxu1 }
 0x20e   :  { %v2491_v16 = vadd.f32 %v633_v12, %v2971_v6  ;;  %v635_v18 = vpop.f32.mrb[3].mxu0  ;;  %v706_v19 = vpop.f32.mrb[3].mxu1  ;;  %v2507_v35 = vadd.f32 %v704_v15, %v2980_v34 }
 0x20f   :  { %v2492_v22 = vadd.f32 %v635_v18, %v2973_v10  ;;  %v2508_v32 = vadd.f32 %v706_v19, %v2977_v31 }
 0x210   :  { %v1879_v23 = vmul.f32 -1.442695, %v2491_v16 }
 0x211   :  { %v1880_v28 = vmul.f32 -1.442695, %v2492_v22  ;;  %v1881_v33 = vmul.f32 -1.442695, %v2508_v32 }
 0x212   :  { %2577 = vpow2.f32 %v1879_v23 }
 0x213   :  { %2579 = vpow2.f32 %v1880_v28 }
 0x214   :  { %2581 = vpow2.f32 %v1881_v33 }
 0x215   :  { %2583 = vtanh.f32 %v2507_v35 }
 0x21c   :  { %v2578_v36 = vpop.eup %2577 }
 0x21d   :  { %v2580_v39 = vpop.eup %2579  ;;  %v716_v42 = vadd.f32 1.0, %v2578_v36 }
 0x21e   :  { %v722_v47 = vadd.f32 1.0, %v2580_v39  ;;  %v2582_v48 = vpop.eup %2581 }
 0x21f   :  { %2585 = vrcp.f32 %v716_v42  ;;  %v2584_v49 = vpop.eup %2583  ;;  %v729_v55 = vadd.f32 1.0, %v2582_v48 }
 0x220   :  { %2587 = vrcp.f32 %v722_v47 }
 0x221   :  { %2589 = vrcp.f32 %v729_v55 }
 0x229   :  { %v2586_v50 = vpop.eup %2585 }
 0x22a   :  { %v2588_v51 = vpop.eup %2587  ;;  %v733_v52 = vmul.f32 %v2586_v50, %v2584_v49 }
 0x22b   :  { %v732_v62 = vmul.f32 %v2588_v51, %v2983_v1  ;;  %v2590_v2 = vpop.eup %2589 }
 0x22d   :  { %v3025_v63 = vadd.f32 %v733_v52, %v732_v62 }
 0x22f   :  { %2591 = vtanh.f32 %v3025_v63 }
 0x239   :  { %v2592_v5 = vpop.eup %2591 }
 0x23a   :  { %v736_v11 = vmul.f32 %v2592_v5, %v2590_v2 }
 0x23c   :  { %802 = vmatmul.mubr.f32.vlgmr.msra.gmra.mrb[4].mxu0 %v736_v11  ;;  %873 = vmatmul.mubr.f32.vlgmr.msra.gmra.mrb[4].mxu1 %v736_v11 }
 0x23d   :  { %2148 = vmatpush1.bf16.msra.mxu0 %v2783_v14  ;;  %2180 = vmatpush1.bf16.msra.mxu1 %v2787_v17 }
 0x23e   :  { %2150 = vmatprep.subr.bf16.mxu0 %v2796_v25  ;;  %2182 = vmatprep.subr.bf16.mxu1 %v2798_v26 }
 0x23f   :  { %971 = vmatprep.mubr.f32.mxu0 %v2716_v0  ;;  %1042 = vmatprep.mubr.f32.mxu1 %v2716_v0 }
 0x241   :  { %2152 = vmatpush1.bf16.msra.mxu0 %v2802_v29  ;;  %2184 = vmatpush1.bf16.msra.mxu1 %v2804_v30 }
 0x242   :  { %2154 = vmatprep.subr.bf16.mxu0 %v2815_v40  ;;  %2186 = vmatprep.subr.bf16.mxu1 %v2817_v41 }
 0x245   :  { %2156 = vmatpush1.bf16.msra.mxu0 %v2821_v44  ;;  %2188 = vmatpush1.bf16.msra.mxu1 %v2823_v45 }
 0x246   :  { %2158 = vmatprep.subr.bf16.mxu0 %v2834_v53  ;;  %2190 = vmatprep.subr.bf16.mxu1 %v2836_v54 }
 0x249   :  { %2160 = vmatpush1.bf16.msra.mxu0 %v2840_v57  ;;  %2192 = vmatpush1.bf16.msra.mxu1 %v2842_v58 }
 0x24a   :  { %2162 = vmatprep.subr.bf16.mxu0 %v2853_v3  ;;  %2194 = vmatprep.subr.bf16.mxu1 %v2855_v4 }
 0x24d   :  { %2164 = vmatpush1.bf16.msra.mxu0 %v2859_v7  ;;  %2196 = vmatpush1.bf16.msra.mxu1 %v2861_v8 }
 0x24e   :  { %2166 = vmatprep.subr.bf16.mxu0 %v2872_v20  ;;  %2198 = vmatprep.subr.bf16.mxu1 %v2874_v21 }
 0x251   :  { %2168 = vmatpush1.bf16.msra.mxu0 %v2878_v24  ;;  %2200 = vmatpush1.bf16.msra.mxu1 %v2880_v27 }
 0x252   :  { %2170 = vmatprep.subr.bf16.mxu0 %v2891_v37  ;;  %2202 = vmatprep.subr.bf16.mxu1 %v2893_v38 }
 0x255   :  { %2172 = vmatpush1.bf16.msra.mxu0 %v2897_v43  ;;  %2204 = vmatpush1.bf16.msra.mxu1 %v2899_v46 }
 0x256   :  { %2174 = vmatprep.subr.bf16.mxu0 %v2910_v56  ;;  %2206 = vmatprep.subr.bf16.mxu1 %v2912_v59 }
 0x259   :  { %2176 = vmatpush1.bf16.msra.mxu0 %v2916_v60  ;;  %2208 = vmatpush1.bf16.msra.mxu1 %v2918_v61 }
 0x25a   :  { %2210 = vmatprep.subr.bf16.mxu0 %v2777_v9  ;;  %2242 = vmatprep.subr.bf16.mxu1 %v2781_v13 }
 0x30f   :  { %v803_v1 = vpop.f32.mrb[4].mxu0  ;;  %v874_v12 = vpop.f32.mrb[4].mxu1 }
 0x310   :  { %v2493_v15 = vadd.f32 %v803_v1, %v2971_v6  ;;  %v805_v16 = vpop.f32.mrb[5].mxu0  ;;  %v876_v18 = vpop.f32.mrb[5].mxu1  ;;  %v2509_v33 = vadd.f32 %v874_v12, %v2980_v34 }
 0x311   :  { %v2494_v19 = vadd.f32 %v805_v16, %v2973_v10  ;;  %v2510_v28 = vadd.f32 %v876_v18, %v2977_v31 }
 0x312   :  { %v1882_v22 = vmul.f32 -1.442695, %v2493_v15 }
 0x313   :  { %v1883_v23 = vmul.f32 -1.442695, %v2494_v19  ;;  %v1884_v32 = vmul.f32 -1.442695, %v2510_v28 }
 0x314   :  { %2593 = vpow2.f32 %v1882_v22 }
 0x315   :  { %2595 = vpow2.f32 %v1883_v23 }
 0x316   :  { %2597 = vpow2.f32 %v1884_v32 }
 0x317   :  { %2599 = vtanh.f32 %v2509_v33 }
 0x31e   :  { %v2594_v35 = vpop.eup %2593 }
 0x31f   :  { %v2596_v36 = vpop.eup %2595  ;;  %v886_v39 = vadd.f32 1.0, %v2594_v35 }
 0x320   :  { %v892_v42 = vadd.f32 1.0, %v2596_v36  ;;  %v2598_v47 = vpop.eup %2597 }
 0x321   :  { %2601 = vrcp.f32 %v886_v39  ;;  %v2600_v48 = vpop.eup %2599  ;;  %v899_v52 = vadd.f32 1.0, %v2598_v47 }
 0x322   :  { %2603 = vrcp.f32 %v892_v42 }
 0x323   :  { %2605 = vrcp.f32 %v899_v52 }
 0x32b   :  { %v2602_v49 = vpop.eup %2601 }
 0x32c   :  { %v2604_v50 = vpop.eup %2603  ;;  %v903_v51 = vmul.f32 %v2602_v49, %v2600_v48 }
 0x32d   :  { %v902_v55 = vmul.f32 %v2604_v50, %v3025_v63  ;;  %v2606_v2 = vpop.eup %2605 }
 0x32f   :  { %v3067_v62 = vadd.f32 %v903_v51, %v902_v55 }
 0x331   :  { %2607 = vtanh.f32 %v3067_v62 }
 0x33b   :  { %v2608_v5 = vpop.eup %2607 }
 0x33c   :  { %v906_v11 = vmul.f32 %v2608_v5, %v2606_v2 }
 0x33e   :  { %972 = vmatmul.mubr.f32.vlgmr.msra.gmra.mrb[6].mxu0 %v906_v11  ;;  %1043 = vmatmul.mubr.f32.vlgmr.msra.gmra.mrb[6].mxu1 %v906_v11 }
 0x33f   :  { %2212 = vmatpush1.bf16.msra.mxu0 %v2783_v14  ;;  %2244 = vmatpush1.bf16.msra.mxu1 %v2787_v17 }
 0x340   :  { %2214 = vmatprep.subr.bf16.mxu0 %v2796_v25  ;;  %2246 = vmatprep.subr.bf16.mxu1 %v2798_v26 }
 0x341   :  { %1141 = vmatprep.mubr.f32.mxu0 %v2716_v0  ;;  %1212 = vmatprep.mubr.f32.mxu1 %v2716_v0 }
 0x343   :  { %2216 = vmatpush1.bf16.msra.mxu0 %v2802_v29  ;;  %2248 = vmatpush1.bf16.msra.mxu1 %v2804_v30 }
 0x344   :  { %2218 = vmatprep.subr.bf16.mxu0 %v2815_v40  ;;  %2250 = vmatprep.subr.bf16.mxu1 %v2817_v41 }
 0x347   :  { %2220 = vmatpush1.bf16.msra.mxu0 %v2821_v44  ;;  %2252 = vmatpush1.bf16.msra.mxu1 %v2823_v45 }
 0x348   :  { %2222 = vmatprep.subr.bf16.mxu0 %v2834_v53  ;;  %2254 = vmatprep.subr.bf16.mxu1 %v2836_v54 }
 0x34b   :  { %2224 = vmatpush1.bf16.msra.mxu0 %v2840_v57  ;;  %2256 = vmatpush1.bf16.msra.mxu1 %v2842_v58 }
 0x34c   :  { %2226 = vmatprep.subr.bf16.mxu0 %v2853_v3  ;;  %2258 = vmatprep.subr.bf16.mxu1 %v2855_v4 }
 0x34f   :  { %2228 = vmatpush1.bf16.msra.mxu0 %v2859_v7  ;;  %2260 = vmatpush1.bf16.msra.mxu1 %v2861_v8 }
 0x350   :  { %2230 = vmatprep.subr.bf16.mxu0 %v2872_v20  ;;  %2262 = vmatprep.subr.bf16.mxu1 %v2874_v21 }
 0x353   :  { %2232 = vmatpush1.bf16.msra.mxu0 %v2878_v24  ;;  %2264 = vmatpush1.bf16.msra.mxu1 %v2880_v27 }
 0x354   :  { %2234 = vmatprep.subr.bf16.mxu0 %v2891_v37  ;;  %2266 = vmatprep.subr.bf16.mxu1 %v2893_v38 }
 0x357   :  { %2236 = vmatpush1.bf16.msra.mxu0 %v2897_v43  ;;  %2268 = vmatpush1.bf16.msra.mxu1 %v2899_v46 }
 0x358   :  { %2238 = vmatprep.subr.bf16.mxu0 %v2910_v56  ;;  %2270 = vmatprep.subr.bf16.mxu1 %v2912_v59 }
 0x35b   :  { %2240 = vmatpush1.bf16.msra.mxu0 %v2916_v60  ;;  %2272 = vmatpush1.bf16.msra.mxu1 %v2918_v61 }
 0x35c   :  { %2274 = vmatprep.subr.bf16.mxu0 %v2777_v9  ;;  %2306 = vmatprep.subr.bf16.mxu1 %v2781_v13 }
 0x411   :  { %v973_v63 = vpop.f32.mrb[6].mxu0  ;;  %v1044_v1 = vpop.f32.mrb[6].mxu1 }
 0x412   :  { %v2495_v12 = vadd.f32 %v973_v63, %v2971_v6  ;;  %v975_v15 = vpop.f32.mrb[7].mxu0  ;;  %v1046_v16 = vpop.f32.mrb[7].mxu1  ;;  %v2511_v32 = vadd.f32 %v1044_v1, %v2980_v34 }
 0x413   :  { %v2496_v18 = vadd.f32 %v975_v15, %v2973_v10  ;;  %v2512_v23 = vadd.f32 %v1046_v16, %v2977_v31 }
 0x414   :  { %v1885_v19 = vmul.f32 -1.442695, %v2495_v12 }
 0x415   :  { %v1886_v22 = vmul.f32 -1.442695, %v2496_v18  ;;  %v1887_v28 = vmul.f32 -1.442695, %v2512_v23 }
 0x416   :  { %2609 = vpow2.f32 %v1885_v19 }
 0x417   :  { %2611 = vpow2.f32 %v1886_v22 }
 0x418   :  { %2613 = vpow2.f32 %v1887_v28 }
 0x419   :  { %2615 = vtanh.f32 %v2511_v32 }
 0x420   :  { %v2610_v33 = vpop.eup %2609 }
 0x421   :  { %v2612_v35 = vpop.eup %2611  ;;  %v1056_v36 = vadd.f32 1.0, %v2610_v33 }
 0x422   :  { %v1062_v39 = vadd.f32 1.0, %v2612_v35  ;;  %v2614_v42 = vpop.eup %2613 }
 0x423   :  { %2617 = vrcp.f32 %v1056_v36  ;;  %v2616_v47 = vpop.eup %2615  ;;  %v1069_v51 = vadd.f32 1.0, %v2614_v42 }
 0x424   :  { %2619 = vrcp.f32 %v1062_v39 }
 0x425   :  { %2621 = vrcp.f32 %v1069_v51 }
 0x42d   :  { %v2618_v48 = vpop.eup %2617 }
 0x42e   :  { %v2620_v49 = vpop.eup %2619  ;;  %v1073_v50 = vmul.f32 %v2618_v48, %v2616_v47 }
 0x42f   :  { %v1072_v52 = vmul.f32 %v2620_v49, %v3067_v62  ;;  %v2622_v2 = vpop.eup %2621 }
 0x431   :  { %v3109_v55 = vadd.f32 %v1073_v50, %v1072_v52 }
 0x433   :  { %2623 = vtanh.f32 %v3109_v55 }
 0x43d   :  { %v2624_v5 = vpop.eup %2623 }
 0x43e   :  { %v1076_v11 = vmul.f32 %v2624_v5, %v2622_v2 }
 0x440   :  { %1142 = vmatmul.mubr.f32.vlgmr.msra.gmra.mrb[8].mxu0 %v1076_v11  ;;  %1213 = vmatmul.mubr.f32.vlgmr.msra.gmra.mrb[8].mxu1 %v1076_v11 }
 0x441   :  { %2276 = vmatpush1.bf16.msra.mxu0 %v2783_v14  ;;  %2308 = vmatpush1.bf16.msra.mxu1 %v2787_v17 }
 0x442   :  { %2278 = vmatprep.subr.bf16.mxu0 %v2796_v25  ;;  %2310 = vmatprep.subr.bf16.mxu1 %v2798_v26 }
 0x443   :  { %1311 = vmatprep.mubr.f32.mxu0 %v2716_v0  ;;  %1382 = vmatprep.mubr.f32.mxu1 %v2716_v0 }
 0x445   :  { %2280 = vmatpush1.bf16.msra.mxu0 %v2802_v29  ;;  %2312 = vmatpush1.bf16.msra.mxu1 %v2804_v30 }
 0x446   :  { %2282 = vmatprep.subr.bf16.mxu0 %v2815_v40  ;;  %2314 = vmatprep.subr.bf16.mxu1 %v2817_v41 }
 0x449   :  { %2284 = vmatpush1.bf16.msra.mxu0 %v2821_v44  ;;  %2316 = vmatpush1.bf16.msra.mxu1 %v2823_v45 }
 0x44a   :  { %2286 = vmatprep.subr.bf16.mxu0 %v2834_v53  ;;  %2318 = vmatprep.subr.bf16.mxu1 %v2836_v54 }
 0x44d   :  { %2288 = vmatpush1.bf16.msra.mxu0 %v2840_v57  ;;  %2320 = vmatpush1.bf16.msra.mxu1 %v2842_v58 }
 0x44e   :  { %2290 = vmatprep.subr.bf16.mxu0 %v2853_v3  ;;  %2322 = vmatprep.subr.bf16.mxu1 %v2855_v4 }
 0x451   :  { %2292 = vmatpush1.bf16.msra.mxu0 %v2859_v7  ;;  %2324 = vmatpush1.bf16.msra.mxu1 %v2861_v8 }
 0x452   :  { %2294 = vmatprep.subr.bf16.mxu0 %v2872_v20  ;;  %2326 = vmatprep.subr.bf16.mxu1 %v2874_v21 }
 0x455   :  { %2296 = vmatpush1.bf16.msra.mxu0 %v2878_v24  ;;  %2328 = vmatpush1.bf16.msra.mxu1 %v2880_v27 }
 0x456   :  { %2298 = vmatprep.subr.bf16.mxu0 %v2891_v37  ;;  %2330 = vmatprep.subr.bf16.mxu1 %v2893_v38 }
 0x459   :  { %2300 = vmatpush1.bf16.msra.mxu0 %v2897_v43  ;;  %2332 = vmatpush1.bf16.msra.mxu1 %v2899_v46 }
 0x45a   :  { %2302 = vmatprep.subr.bf16.mxu0 %v2910_v56  ;;  %2334 = vmatprep.subr.bf16.mxu1 %v2912_v59 }
 0x45d   :  { %2304 = vmatpush1.bf16.msra.mxu0 %v2916_v60  ;;  %2336 = vmatpush1.bf16.msra.mxu1 %v2918_v61 }
 0x45e   :  { %2338 = vmatprep.subr.bf16.mxu0 %v2777_v9  ;;  %2370 = vmatprep.subr.bf16.mxu1 %v2781_v13 }
 0x513   :  { %v1143_v62 = vpop.f32.mrb[8].mxu0  ;;  %v1214_v63 = vpop.f32.mrb[8].mxu1 }
 0x514   :  { %v2497_v1 = vadd.f32 %v1143_v62, %v2971_v6  ;;  %v1145_v12 = vpop.f32.mrb[9].mxu0  ;;  %v1216_v15 = vpop.f32.mrb[9].mxu1  ;;  %v2513_v28 = vadd.f32 %v1214_v63, %v2980_v34 }
 0x515   :  { %v2498_v16 = vadd.f32 %v1145_v12, %v2973_v10  ;;  %v2514_v22 = vadd.f32 %v1216_v15, %v2977_v31 }
 0x516   :  { %v1888_v18 = vmul.f32 -1.442695, %v2497_v1 }
 0x517   :  { %v1889_v19 = vmul.f32 -1.442695, %v2498_v16  ;;  %v1890_v23 = vmul.f32 -1.442695, %v2514_v22 }
 0x518   :  { %2625 = vpow2.f32 %v1888_v18 }
 0x519   :  { %2627 = vpow2.f32 %v1889_v19 }
 0x51a   :  { %2629 = vpow2.f32 %v1890_v23 }
 0x51b   :  { %2631 = vtanh.f32 %v2513_v28 }
 0x522   :  { %v2626_v32 = vpop.eup %2625 }
 0x523   :  { %v2628_v33 = vpop.eup %2627  ;;  %v1226_v35 = vadd.f32 1.0, %v2626_v32 }
 0x524   :  { %v1232_v36 = vadd.f32 1.0, %v2628_v33  ;;  %v2630_v39 = vpop.eup %2629 }
 0x525   :  { %2633 = vrcp.f32 %v1226_v35  ;;  %v2632_v42 = vpop.eup %2631  ;;  %v1239_v50 = vadd.f32 1.0, %v2630_v39 }
 0x526   :  { %2635 = vrcp.f32 %v1232_v36 }
 0x527   :  { %2637 = vrcp.f32 %v1239_v50 }
 0x52f   :  { %v2634_v47 = vpop.eup %2633 }
 0x530   :  { %v2636_v48 = vpop.eup %2635  ;;  %v1243_v49 = vmul.f32 %v2634_v47, %v2632_v42 }
 0x531   :  { %v1242_v51 = vmul.f32 %v2636_v48, %v3109_v55  ;;  %v2638_v2 = vpop.eup %2637 }
 0x533   :  { %v3151_v52 = vadd.f32 %v1243_v49, %v1242_v51 }
 0x535   :  { %2639 = vtanh.f32 %v3151_v52 }
 0x53f   :  { %v2640_v5 = vpop.eup %2639 }
 0x540   :  { %v1246_v11 = vmul.f32 %v2640_v5, %v2638_v2  ;;  %v1760_v5 = vld [vmem:[%s3300_s4 + $0x18] sm:$0xff] }
 0x542   :  { %1312 = vmatmul.mubr.f32.vlgmr.msra.gmra.mrb[10].mxu0 %v1246_v11  ;;  %1383 = vmatmul.mubr.f32.vlgmr.msra.gmra.mrb[10].mxu1 %v1246_v11 }
 0x543   :  { %2340 = vmatpush1.bf16.msra.mxu0 %v2783_v14  ;;  %2372 = vmatpush1.bf16.msra.mxu1 %v2787_v17 }
 0x544   :  { %2342 = vmatprep.subr.bf16.mxu0 %v2796_v25  ;;  %2374 = vmatprep.subr.bf16.mxu1 %v2798_v26 }
 0x545   :  { %1481 = vmatprep.mubr.f32.mxu0 %v2716_v0  ;;  %1552 = vmatprep.mubr.f32.mxu1 %v2716_v0 }
 0x547   :  { %2344 = vmatpush1.bf16.msra.mxu0 %v2802_v29  ;;  %2376 = vmatpush1.bf16.msra.mxu1 %v2804_v30 }
 0x548   :  { %2346 = vmatprep.subr.bf16.mxu0 %v2815_v40  ;;  %2378 = vmatprep.subr.bf16.mxu1 %v2817_v41 }
 0x54b   :  { %2348 = vmatpush1.bf16.msra.mxu0 %v2821_v44  ;;  %2380 = vmatpush1.bf16.msra.mxu1 %v2823_v45 }
 0x54c   :  { %2350 = vmatprep.subr.bf16.mxu0 %v2834_v53  ;;  %2382 = vmatprep.subr.bf16.mxu1 %v2836_v54 }
 0x54f   :  { %2352 = vmatpush1.bf16.msra.mxu0 %v2840_v57  ;;  %2384 = vmatpush1.bf16.msra.mxu1 %v2842_v58 }
 0x550   :  { %2354 = vmatprep.subr.bf16.mxu0 %v2853_v3  ;;  %2386 = vmatprep.subr.bf16.mxu1 %v2855_v4 }
 0x553   :  { %2356 = vmatpush1.bf16.msra.mxu0 %v2859_v7  ;;  %2388 = vmatpush1.bf16.msra.mxu1 %v2861_v8 }
 0x554   :  { %2358 = vmatprep.subr.bf16.mxu0 %v2872_v20  ;;  %2390 = vmatprep.subr.bf16.mxu1 %v2874_v21 }
 0x557   :  { %2360 = vmatpush1.bf16.msra.mxu0 %v2878_v24  ;;  %2392 = vmatpush1.bf16.msra.mxu1 %v2880_v27 }
 0x558   :  { %2362 = vmatprep.subr.bf16.mxu0 %v2891_v37  ;;  %2394 = vmatprep.subr.bf16.mxu1 %v2893_v38 }
 0x55b   :  { %2364 = vmatpush1.bf16.msra.mxu0 %v2897_v43  ;;  %2396 = vmatpush1.bf16.msra.mxu1 %v2899_v46 }
 0x55c   :  { %2366 = vmatprep.subr.bf16.mxu0 %v2910_v56  ;;  %2398 = vmatprep.subr.bf16.mxu1 %v2912_v59 }
 0x55f   :  { %2368 = vmatpush1.bf16.msra.mxu0 %v2916_v60  ;;  %2400 = vmatpush1.bf16.msra.mxu1 %v2918_v61 }
 0x560   :  { %2402 = vmatprep.subr.bf16.mxu0 %v2777_v9  ;;  %2434 = vmatprep.subr.bf16.mxu1 %v2781_v13 }
 0x615   :  { %v1313_v55 = vpop.f32.mrb[10].mxu0  ;;  %v1384_v62 = vpop.f32.mrb[10].mxu1 }
 0x616   :  { %v2499_v63 = vadd.f32 %v1313_v55, %v2971_v6  ;;  %v1315_v1 = vpop.f32.mrb[11].mxu0  ;;  %v1386_v12 = vpop.f32.mrb[11].mxu1  ;;  %v2515_v23 = vadd.f32 %v1384_v62, %v2980_v34  ;;  %v1761_v55 = vld [vmem:[%s3300_s4 + $0x20] sm:$0xff]  ;;  %v1762_v62 = vld [vmem:[%s3300_s4 + $0x28] sm:$0xff] }
 0x617   :  { %v2500_v15 = vadd.f32 %v1315_v1, %v2973_v10  ;;  %v2516_v19 = vadd.f32 %v1386_v12, %v2977_v31  ;;  %v1763_v1 = vld [vmem:[%s3300_s4 + $0x30] sm:$0xff]  ;;  %v1764_v12 = vld [vmem:[%s3300_s4 + $0x38] sm:$0xff] }
 0x618   :  { %v1891_v16 = vmul.f32 -1.442695, %v2499_v63  ;;  %v2472_v63 = vpack.c.bf16 %v1762_v62, %v1761_v55 }
 0x619   :  { %v1892_v18 = vmul.f32 -1.442695, %v2500_v15  ;;  %v1893_v22 = vmul.f32 -1.442695, %v2516_v19  ;;  %v2475_v15 = vpack.c.bf16 %v1764_v12, %v1763_v1 }
 0x61a   :  { %2641 = vpow2.f32 %v1891_v16  ;;  %v1765_v16 = vld [vmem:[%s3300_s4 + $0x40] sm:$0xff] }
 0x61b   :  { %2643 = vpow2.f32 %v1892_v18  ;;  %v1766_v18 = vld [vmem:[%s3300_s4 + $0x48] sm:$0xff] }
 0x61c   :  { %2645 = vpow2.f32 %v1893_v22  ;;  %v2478_v19 = vpack.c.bf16 %v1766_v18, %v1765_v16  ;;  %v1767_v22 = vld [vmem:[%s3300_s4 + $0x50] sm:$0xff] }
 0x61d   :  { %2647 = vtanh.f32 %v2515_v23  ;;  %v1768_v23 = vld [vmem:[%s3300_s4 + $0x58] sm:$0xff] }
 0x624   :  { %v2642_v9 = vpop.eup %2641 }
 0x625   :  { %v2644_v28 = vpop.eup %2643  ;;  %v1396_v13 = vadd.f32 1.0, %v2642_v9  ;;  %v1769_v9 = vld [vmem:[%s3300_s4 + $0x60] sm:$0xff] }
 0x626   :  { %v1402_v32 = vadd.f32 1.0, %v2644_v28  ;;  %v2646_v33 = vpop.eup %2645  ;;  %v2481_v28 = vpack.c.bf16 %v1768_v23, %v1767_v22 }
 0x627   :  { %2649 = vrcp.f32 %v1396_v13  ;;  %v2648_v35 = vpop.eup %2647  ;;  %v1409_v47 = vadd.f32 1.0, %v2646_v33  ;;  %v1770_v13 = vld [vmem:[%s3300_s4 + $0x68] sm:$0xff]  ;;  %v1771_v33 = vld [vmem:[%s3300_s4 + $0x70] sm:$0xff] }
 0x628   :  { %2651 = vrcp.f32 %v1402_v32  ;;  %v2484_v32 = vpack.c.bf16 %v1770_v13, %v1769_v9 }
 0x629   :  { %2653 = vrcp.f32 %v1409_v47 }
 0x631   :  { %v2650_v36 = vpop.eup %2649 }
 0x632   :  { %v2652_v39 = vpop.eup %2651  ;;  %v1413_v42 = vmul.f32 %v2650_v36, %v2648_v35  ;;  %v1772_v35 = vld [vmem:[%s3300_s4 + $0x78] sm:$0xff] }
 0x633   :  { %v1412_v48 = vmul.f32 %v2652_v39, %v3151_v52  ;;  %v2654_v50 = vpop.eup %2653  ;;  %v1759_v52 = vld [vmem:[%s3300_s4 + $0x10] sm:$0xff]  ;;  %v2487_v36 = vpack.c.bf16 %v1772_v35, %v1771_v33 }
 0x634   :  { %v2469_v11 = vpack.c.bf16 %v1760_v5, %v1759_v52 }
 0x635   :  { %v3193_v49 = vadd.f32 %v1413_v42, %v1412_v48 }
 0x637   :  { %2655 = vtanh.f32 %v3193_v49 }
 0x641   :  { %v2656_v51 = vpop.eup %2655 }
 0x642   :  { %v1416_v2 = vmul.f32 %v2656_v51, %v2654_v50 }
 0x644   :  { %1482 = vmatmul.mubr.f32.vlgmr.msra.gmra.mrb[12].mxu0 %v1416_v2  ;;  %1553 = vmatmul.mubr.f32.vlgmr.msra.gmra.mrb[12].mxu1 %v1416_v2 }
 0x645   :  { %2404 = vmatpush1.bf16.msra.mxu0 %v2783_v14  ;;  %2436 = vmatpush1.bf16.msra.mxu1 %v2787_v17 }
 0x646   :  { %2406 = vmatprep.subr.bf16.mxu0 %v2796_v25  ;;  %2438 = vmatprep.subr.bf16.mxu1 %v2798_v26 }
 0x647   :  { %1651 = vmatprep.mubr.f32.mxu0 %v2716_v0  ;;  %1722 = vmatprep.mubr.f32.mxu1 %v2716_v0 }
 0x649   :  { %2408 = vmatpush1.bf16.msra.mxu0 %v2802_v29  ;;  %2440 = vmatpush1.bf16.msra.mxu1 %v2804_v30 }
 0x64a   :  { %2410 = vmatprep.subr.bf16.mxu0 %v2815_v40  ;;  %2442 = vmatprep.subr.bf16.mxu1 %v2817_v41 }
 0x64d   :  { %2412 = vmatpush1.bf16.msra.mxu0 %v2821_v44  ;;  %2444 = vmatpush1.bf16.msra.mxu1 %v2823_v45 }
 0x64e   :  { %2414 = vmatprep.subr.bf16.mxu0 %v2834_v53  ;;  %2446 = vmatprep.subr.bf16.mxu1 %v2836_v54 }
 0x651   :  { %2416 = vmatpush1.bf16.msra.mxu0 %v2840_v57  ;;  %2448 = vmatpush1.bf16.msra.mxu1 %v2842_v58 }
 0x652   :  { %2418 = vmatprep.subr.bf16.mxu0 %v2853_v3  ;;  %2450 = vmatprep.subr.bf16.mxu1 %v2855_v4 }
 0x655   :  { %2420 = vmatpush1.bf16.msra.mxu0 %v2859_v7  ;;  %2452 = vmatpush1.bf16.msra.mxu1 %v2861_v8 }
 0x656   :  { %2422 = vmatprep.subr.bf16.mxu0 %v2872_v20  ;;  %2454 = vmatprep.subr.bf16.mxu1 %v2874_v21 }
 0x659   :  { %2424 = vmatpush1.bf16.msra.mxu0 %v2878_v24  ;;  %2456 = vmatpush1.bf16.msra.mxu1 %v2880_v27 }
 0x65a   :  { %2426 = vmatprep.subr.bf16.mxu0 %v2891_v37  ;;  %2458 = vmatprep.subr.bf16.mxu1 %v2893_v38 }
 0x65d   :  { %2428 = vmatpush1.bf16.msra.mxu0 %v2897_v43  ;;  %2460 = vmatpush1.bf16.msra.mxu1 %v2899_v46 }
 0x65e   :  { %2430 = vmatprep.subr.bf16.mxu0 %v2910_v56  ;;  %2462 = vmatprep.subr.bf16.mxu1 %v2912_v59  ;;  %v1757_v56 = vld [vmem:[%s3300_s4] sm:$0xff]  ;;  %v1758_v59 = vld [vmem:[%s3300_s4 + $0x8] sm:$0xff] }
 0x661   :  { %2432 = vmatpush1.bf16.msra.mxu0 %v2916_v60  ;;  %2464 = vmatpush1.bf16.msra.mxu1 %v2918_v61  ;;  %v2466_v60 = vpack.c.bf16 %v1758_v59, %v1757_v56  ;;  %v2717_v61 = vmov 0.0|0.0  }
 0x662   :  { %2465 = vmatprep.subr.bf16.mxu0 %v2717_v61 }
 0x717   :  { %v1483_v14 = vpop.f32.mrb[12].mxu0  ;;  %v1554_v17 = vpop.f32.mrb[12].mxu1 }
 0x718   :  { %v2501_v25 = vadd.f32 %v1483_v14, %v2971_v6  ;;  %v1485_v26 = vpop.f32.mrb[13].mxu0  ;;  %v1556_v29 = vpop.f32.mrb[13].mxu1  ;;  %v2517_v53 = vadd.f32 %v1554_v17, %v2980_v34 }
 0x719   :  { %v2502_v30 = vadd.f32 %v1485_v26, %v2973_v10  ;;  %v2518_v44 = vadd.f32 %v1556_v29, %v2977_v31 }
 0x71a   :  { %v1894_v40 = vmul.f32 -1.442695, %v2501_v25 }
 0x71b   :  { %v1895_v41 = vmul.f32 -1.442695, %v2502_v30  ;;  %v1896_v45 = vmul.f32 -1.442695, %v2518_v44 }
 0x71c   :  { %2657 = vpow2.f32 %v1894_v40 }
 0x71d   :  { %2659 = vpow2.f32 %v1895_v41 }
 0x71e   :  { %2661 = vpow2.f32 %v1896_v45 }
 0x71f   :  { %2663 = vtanh.f32 %v2517_v53 }
 0x726   :  { %v2658_v54 = vpop.eup %2657 }
 0x727   :  { %v2660_v57 = vpop.eup %2659  ;;  %v1566_v58 = vadd.f32 1.0, %v2658_v54 }
 0x728   :  { %v1572_v3 = vadd.f32 1.0, %v2660_v57  ;;  %v2662_v4 = vpop.eup %2661 }
 0x729   :  { %2665 = vrcp.f32 %v1566_v58  ;;  %v2664_v7 = vpop.eup %2663  ;;  %v1579_v24 = vadd.f32 1.0, %v2662_v4  ;;  %v1900_v58 = vld [vmem:[%s3301_s5] ss:$0 sm:$0xff] }
 0x72a   :  { %2667 = vrcp.f32 %v1572_v3 }
 0x72b   :  { %2669 = vrcp.f32 %v1579_v24 }
 0x733   :  { %v2666_v8 = vpop.eup %2665 }
 0x734   :  { %v2668_v20 = vpop.eup %2667  ;;  %v1583_v21 = vmul.f32 %v2666_v8, %v2664_v7 }
 0x735   :  { %v1582_v27 = vmul.f32 %v2668_v20, %v3193_v49  ;;  %v2670_v38 = vpop.eup %2669 }
 0x737   :  { %v3233_v37 = vadd.f32 %v1583_v21, %v1582_v27 }
 0x739   :  { %2671 = vtanh.f32 %v3233_v37 }
 0x743   :  { %v2672_v43 = vpop.eup %2671 }
 0x744   :  { %v1586_v46 = vmul.f32 %v2672_v43, %v2670_v38 }
 0x746   :  { %1652 = vmatmul.mubr.f32.vlgmr.msra.gmra.mrb[14].mxu0 %v1586_v46  ;;  %1723 = vmatmul.mubr.f32.vlgmr.msra.gmra.mrb[14].mxu1 %v1586_v46 }
 0x747   :  { %2467 = vmatpush3.bf16.msra.mxu0 %v2466_v60  ;;  %1950 = vmatprep.mubr.msk.f32.mxu0 %vm2718_vm2, %v2716_v0 }
 0x748   :  { %2468 = vmatprep.subr.bf16.mxu0 %v2717_v61 }
 0x74b   :  { %2470 = vmatpush3.bf16.msra.mxu0 %v2469_v11 }
 0x74c   :  { %2471 = vmatprep.subr.bf16.mxu0 %v2717_v61 }
 0x74f   :  { %2473 = vmatpush3.bf16.msra.mxu0 %v2472_v63 }
 0x750   :  { %2474 = vmatprep.subr.bf16.mxu0 %v2717_v61 }
 0x753   :  { %2476 = vmatpush3.bf16.msra.mxu0 %v2475_v15 }
 0x754   :  { %2477 = vmatprep.subr.bf16.mxu0 %v2717_v61 }
 0x757   :  { %2479 = vmatpush3.bf16.msra.mxu0 %v2478_v19 }
 0x758   :  { %2480 = vmatprep.subr.bf16.mxu0 %v2717_v61 }
 0x75b   :  { %2482 = vmatpush3.bf16.msra.mxu0 %v2481_v28 }
 0x75c   :  { %2483 = vmatprep.subr.bf16.mxu0 %v2717_v61 }
 0x75f   :  { %2485 = vmatpush3.bf16.msra.mxu0 %v2484_v32 }
 0x760   :  { %2486 = vmatprep.subr.bf16.mxu0 %v2717_v61 }
 0x763   :  { %2488 = vmatpush3.bf16.msra.mxu0 %v2487_v36 }
 0x819   :  { %v1653_v39 = vpop.f32.mrb[14].mxu0  ;;  %v1724_v42 = vpop.f32.mrb[14].mxu1 }
 0x81a   :  { %v2503_v47 = vadd.f32 %v1653_v39, %v2971_v6  ;;  %v1655_v0 = vpop.f32.mrb[15].mxu0  ;;  %v1726_v48 = vpop.f32.mrb[15].mxu1  ;;  %v2519_v17 = vadd.f32 %v1724_v42, %v2980_v34 }
 0x81b   :  { %v2504_v49 = vadd.f32 %v1655_v0, %v2973_v10  ;;  %v2520_v2 = vadd.f32 %v1726_v48, %v2977_v31 }
 0x81c   :  { %v1897_v50 = vmul.f32 -1.442695, %v2503_v47 }
 0x81d   :  { %v1898_v51 = vmul.f32 -1.442695, %v2504_v49  ;;  %v1899_v14 = vmul.f32 -1.442695, %v2520_v2 }
 0x81e   :  { %2673 = vpow2.f32 %v1897_v50 }
 0x81f   :  { %2675 = vpow2.f32 %v1898_v51 }
 0x820   :  { %2677 = vpow2.f32 %v1899_v14 }
 0x821   :  { %2679 = vtanh.f32 %v2519_v17 }
 0x828   :  { %v2674_v25 = vpop.eup %2673 }
 0x829   :  { %v2676_v26 = vpop.eup %2675  ;;  %v1736_v29 = vadd.f32 1.0, %v2674_v25 }
 0x82a   :  { %v1742_v30 = vadd.f32 1.0, %v2676_v26  ;;  %v2678_v6 = vpop.eup %2677 }
 0x82b   :  { %2681 = vrcp.f32 %v1736_v29  ;;  %v2680_v40 = vpop.eup %2679  ;;  %v1749_v45 = vadd.f32 1.0, %v2678_v6 }
 0x82c   :  { %2683 = vrcp.f32 %v1742_v30 }
 0x82d   :  { %2685 = vrcp.f32 %v1749_v45 }
 0x835   :  { %v2682_v10 = vpop.eup %2681 }
 0x836   :  { %v2684_v41 = vpop.eup %2683  ;;  %v1753_v44 = vmul.f32 %v2682_v10, %v2680_v40 }
 0x837   :  { %v1752_v53 = vmul.f32 %v2684_v41, %v3233_v37  ;;  %v2686_v34 = vpop.eup %2685 }
 0x839   :  { %v1754_v31 = vadd.f32 %v1753_v44, %v1752_v53 }
 0x83b   :  { %2687 = vtanh.f32 %v1754_v31 }
 0x845   :  { %v2688_v54 = vpop.eup %2687 }
 0x846   :  { %v1756_v57 = vmul.f32 %v2688_v54, %v2686_v34 }
 0x848   :  { %1951 = vmatmul.mubr.f32.vlgmr.msra.gmra.mrb[16].mxu0 %v1756_v57 }
 0x91b   :  { %v1846_v3 = vpop.f32.mrb[16].mxu0 }
 0x91c   :  { %v1847_v4 = vadd.f32 %v1900_v58, %v1846_v3  ;;  %v1952_v7 = vpop.f32.mrb[17].mxu0 }
 0x91e   :  { %1850 = vst [vmem:[%s3302_s6] sm:$0xff] %v1847_v4 }
 0x91f   :  { %1855 = vsyncpa [#allocation3], 1 }

</bundles_post_ra>
